<compile_context>
chip_gen: v5e
topology: v5e:2x2
jax: 0.10.0
libtpu: 0.0.40
codegen_flags: <defaults>
</compile_context>

<pallas_src>
import functools

import jax
import jax.numpy as jnp
from jax.experimental import pallas as pl
from jax.experimental.pallas import tpu as pltpu

_MIB = 1024 * 1024


# ---------------------------------------------------------------------------
# Chip-aware sizing
# ---------------------------------------------------------------------------
@functools.lru_cache(maxsize=None)
def _chip_params():
    """(block_budget_bytes, vmem_limit_bytes, num_tensorcores) for this chip."""
    vmem = None
    cores = None
    try:
        info = pltpu.get_tpu_info()
        v = getattr(info, "vmem_capacity_bytes", None)
        if v:
            vmem = int(v)
        for name in ("num_cores", "core_count", "num_tensorcores",
                     "tensorcore_count"):
            c = getattr(info, name, None)
            if c:
                cores = int(c)
                break
    except Exception:
        pass
    if vmem is None:
        vmem = 64 * _MIB                       # conservative (v7x-sized) default
    if cores is None:
        cores = 2 if vmem <= 64 * _MIB else 1  # v7x is the small-VMEM 2-TC part
    if vmem >= 100 * _MIB:                     # v5e / v6e: 128 MiB physical VMEM
        return 16 * _MIB, 64 * _MIB, cores
    # v7x: 64 MiB physical VMEM, 2 TCs.  8 MiB of in+out per step keeps the
    # double-buffered DMA slabs + interleave temporaries safely under the
    # 32 MiB scoped limit while shrinking the fixed per-step overhead share.
    return 8 * _MIB, 32 * _MIB, max(cores, 2)


def _sublane(itemsize):
    """Dtype-native second-minor tile multiple (8 f32 / 16 bf16 / 32 int8)."""
    return max(8, 32 // max(1, int(itemsize)))


@functools.lru_cache(maxsize=None)
def _low_half_is_index0() -> bool:
    """Does lax.bitcast_convert_type(u32 -> 16-bit) put the low bits at idx 0?"""
    try:
        probe = jax.lax.bitcast_convert_type(jnp.uint32(1), jnp.uint16)
        return bool(probe[0] == 1)
    except Exception:
        return True  # little-endian convention on all current XLA backends


# ---------------------------------------------------------------------------
# In-kernel helpers
# ---------------------------------------------------------------------------
def _bf16_round_bits(x_f32):
    """f32 -> bf16 via the native RNE convert (NaN-safe), as uint32 < 2**16."""
    rounded = x_f32.astype(jnp.bfloat16).astype(jnp.float32)
    return pltpu.bitcast(rounded, jnp.uint32) >> 16


def _interleave_lanes(gx, gy, method):
    """Per-pixel lane interleave: out[..., 2w] = gx[..., w], out[..., 2w+1] = gy."""
    lead, w = gx.shape[:-1], gx.shape[-1]
    if method == "reshape":
        return jnp.stack([gx, gy], axis=-1).reshape(*lead, 2 * w)
    # "take": dilate each operand by 2 along lanes, then select by lane parity.
    idx = jnp.arange(2 * w, dtype=jnp.int32) // 2
    x2 = jnp.take(gx, idx, axis=-1, mode="clip")
    y2 = jnp.take(gy, idx, axis=-1, mode="clip")
    lane = jax.lax.broadcasted_iota(jnp.int32, x2.shape, x2.ndim - 1)
    return jnp.where(lane % 2 == 0, x2, y2)


def _flow_channels(flow_ref, flat):
    if flat:
        fx = flow_ref[:, 0, :].astype(jnp.float32)
        fy = flow_ref[:, 1, :].astype(jnp.float32)
    else:
        fx = flow_ref[:, 0, :, :].astype(jnp.float32)
        fy = flow_ref[:, 1, :, :].astype(jnp.float32)
    return fx, fy


# ---------------------------------------------------------------------------
# Kernel bodies (each handles both the 2-D row-tiled and the flattened mode)
# ---------------------------------------------------------------------------
def _kernel_nchw(bx_ref, by_ref, flow_ref, out_ref, *, sx, sy, flat):
    fx, fy = _flow_channels(flow_ref, flat)
    gx = bx_ref[...].astype(jnp.float32) + fx * sx
    gy = by_ref[...].astype(jnp.float32) + fy * sy
    if flat:
        out_ref[:, 0, :] = gx.astype(out_ref.dtype)
        out_ref[:, 1, :] = gy.astype(out_ref.dtype)
    else:
        out_ref[:, 0, :, :] = gx.astype(out_ref.dtype)
        out_ref[:, 1, :, :] = gy.astype(out_ref.dtype)


def _kernel_packed(bx_ref, by_ref, flow_ref, out_ref, *, sx, sy, flat, x_in_low):
    # (x, y) bf16-rounded and packed into one lane-dense uint32 per pixel.
    fx, fy = _flow_channels(flow_ref, flat)
    gx = bx_ref[...].astype(jnp.float32) + fx * sx
    gy = by_ref[...].astype(jnp.float32) + fy * sy
    xb = _bf16_round_bits(gx)
    yb = _bf16_round_bits(gy)
    if x_in_low:
        out_ref[...] = xb | (yb << 16)
    else:
        out_ref[...] = yb | (xb << 16)


def _kernel_nhwc(bx_ref, by_ref, flow_ref, out_ref, *, sx, sy, flat, method):
    # Full-precision NHWC: interleave x/y along lanes -> (..., 2W) slab.
    fx, fy = _flow_channels(flow_ref, flat)
    gx = bx_ref[...].astype(jnp.float32) + fx * sx
    gy = by_ref[...].astype(jnp.float32) + fy * sy
    out_ref[...] = _interleave_lanes(gx, gy, method).astype(out_ref.dtype)


# ---------------------------------------------------------------------------
# Tiling
# ---------------------------------------------------------------------------
def _choose_tiles_2d(N, H, row_bytes, sub, block_rows, block_batch, budget, cores):
    if block_rows is None:
        max_rows = max(1, budget // max(1, row_bytes))
        tH = H if max_rows >= H else max(sub, (max_rows // sub) * sub)
    else:
        tH = max(1, min(block_rows, H))
    if tH < H:
        tH = max(sub, (tH // sub) * sub)
    tH = min(tH, H)

    if block_batch is not None:
        Nb = max(1, min(block_batch, N))
    else:
        Nb = 1
        if tH >= H:  # small spatial size: merge batch items to amortize overhead
            cap = max(1, budget // max(1, H * row_bytes))
            for d in range(min(N, cap), 0, -1):
                if N % d == 0:
                    Nb = d
                    break

    # Feed both TensorCores on multi-TC chips; skip the split on 1-TC parts.
    if cores >= 2 and block_rows is None and block_batch is None:
        steps = ((N + Nb - 1) // Nb) * ((H + tH - 1) // tH)
        if steps < 2:
            if Nb > 1:
                for d in range(Nb - 1, 0, -1):
                    if N % d == 0:
                        Nb = d
                        break
            elif H >= 2 * sub:
                half = (H + 1) // 2
                tH = max(sub, ((half + sub - 1) // sub) * sub)
    return Nb, tH


def _choose_tiles_flat(N, P, px_bytes, block_batch, budget, cores):
    per_item = max(1, P * px_bytes)
    if per_item <= budget:
        tP = P
        if block_batch is not None:
            Nb = max(1, min(block_batch, N))
        else:
            cap = max(1, budget // per_item)
            Nb = 1
            for d in range(min(N, cap), 0, -1):
                if N % d == 0:
                    Nb = d
                    break
    else:
        Nb = max(1, min(block_batch, N)) if block_batch is not None else 1
        lanes = max(128, (budget // max(1, Nb * px_bytes)) // 128 * 128)
        tP = min(P, lanes)

    if cores >= 2 and block_batch is None:
        steps = ((N + Nb - 1) // Nb) * ((P + tP - 1) // tP)
        if steps < 2:
            if Nb > 1:
                for d in range(Nb - 1, 0, -1):
                    if N % d == 0:
                        Nb = d
                        break
            elif P > 128:
                half = (P + 1) // 2
                tP = max(128, ((half + 127) // 128) * 128)
    return Nb, tP


# ---------------------------------------------------------------------------
# pallas_call driver
# ---------------------------------------------------------------------------
def _run(flow, *, path, out_dtype, method=None, block_rows=None, block_batch=None):
    """path: 'nchw' | 'packed' | 'nhwc' (in-kernel lane interleave)."""
    N, C, H, W = flow.shape
    in_dtype = jnp.dtype(flow.dtype)
    out_dtype = jnp.dtype(out_dtype)
    if path == "nhwc" and method not in ("reshape", "take"):
        raise ValueError("nhwc path requires an interleave method")

    # Static scales; guarded so degenerate H==1 / W==1 yields -1 (not inf/NaN).
    sx = 0.0 if W <= 1 else 2.0 / (W - 1.0)
    sy = 0.0 if H <= 1 else 2.0 / (H - 1.0)

    budget, vmem_limit, cores = _chip_params()
    compiler_params = pltpu.CompilerParams(
        dimension_semantics=("parallel", "parallel"),
        vmem_limit_bytes=vmem_limit,
    )

    in_px = 2 * in_dtype.itemsize
    out_px = 4 if path == "packed" else 2 * out_dtype.itemsize

    hlin = jnp.linspace(-1.0, 1.0, W, dtype=jnp.float32)
    vlin = jnp.linspace(-1.0, 1.0, H, dtype=jnp.float32)

    # Lane-dense flattened mode for small / odd W (< 128): fold H into the lanes.
    flat = (W < 128) and (H > 1) and block_rows is None

    if flat:
        P = H * W
        base_x = jnp.tile(hlin, H).reshape(1, P)       # base_x[p] = hlin[p % W]
        base_y = jnp.repeat(vlin, W).reshape(1, P)     # base_y[p] = vlin[p // W]
        flow_in = flow.reshape(N, 2, P)                # free: contiguous NCHW
        Nb, tP = _choose_tiles_flat(N, P, in_px + out_px, block_batch, budget, cores)
        grid = (pl.cdiv(N, Nb), pl.cdiv(P, tP))
        in_specs = [
            pl.BlockSpec((1, tP), lambda b, p: (0, p)),
            pl.BlockSpec((1, tP), lambda b, p: (0, p)),
            pl.BlockSpec((Nb, 2, tP), lambda b, p: (b, 0, p)),
        ]
        if path == "nchw":
            out_shape = jax.ShapeDtypeStruct((N, 2, P), out_dtype)
            out_spec = pl.BlockSpec((Nb, 2, tP), lambda b, p: (b, 0, p))
            kernel = functools.partial(_kernel_nchw, sx=sx, sy=sy, flat=True)
        elif path == "packed":
            out_shape = jax.ShapeDtypeStruct((N, 1, P), jnp.uint32)
            out_spec = pl.BlockSpec((Nb, None, tP), lambda b, p: (b, 0, p))
            kernel = functools.partial(_kernel_packed, sx=sx, sy=sy, flat=True,
                                       x_in_low=_low_half_is_index0())
        else:  # nhwc
            out_shape = jax.ShapeDtypeStruct((N, 1, 2 * P), out_dtype)
            out_spec = pl.BlockSpec((Nb, None, 2 * tP), lambda b, p: (b, 0, p))
            kernel = functools.partial(_kernel_nhwc, sx=sx, sy=sy, flat=True,
                                       method=method)
        raw = pl.pallas_call(
            kernel,
            out_shape=out_shape,
            grid_spec=pltpu.PrefetchScalarGridSpec(
                num_scalar_prefetch=0, grid=grid,
                in_specs=in_specs, out_specs=out_spec),
            compiler_params=compiler_params,
        )(base_x, base_y, flow_in)
        if path == "nchw":
            return raw.reshape(N, 2, H, W)
        if path == "packed":
            return jax.lax.bitcast_convert_type(raw, jnp.bfloat16).reshape(N, H, W, 2)
        return raw.reshape(N, H, W, 2)

    # 2-D row-tiled mode (W >= 128, or explicit block_rows override).
    base_x = hlin.reshape(1, W)
    base_y = vlin.reshape(H, 1)
    sub = max(_sublane(in_dtype.itemsize),
              _sublane(4 if path == "packed" else out_dtype.itemsize))
    Nb, tH = _choose_tiles_2d(N, H, W * (in_px + out_px), sub,
                              block_rows, block_batch, budget, cores)
    grid = (pl.cdiv(N, Nb), pl.cdiv(H, tH))
    in_specs = [
        pl.BlockSpec((1, W), lambda b, h: (0, 0)),
        pl.BlockSpec((tH, 1), lambda b, h: (h, 0)),
        pl.BlockSpec((Nb, 2, tH, W), lambda b, h: (b, 0, h, 0)),
    ]
    if path == "nchw":
        out_shape = jax.ShapeDtypeStruct((N, 2, H, W), out_dtype)
        out_spec = pl.BlockSpec((Nb, 2, tH, W), lambda b, h: (b, 0, h, 0))
        kernel = functools.partial(_kernel_nchw, sx=sx, sy=sy, flat=False)
    elif path == "packed":
        out_shape = jax.ShapeDtypeStruct((N, H, W), jnp.uint32)
        out_spec = pl.BlockSpec((Nb, tH, W), lambda b, h: (b, h, 0))
        kernel = functools.partial(_kernel_packed, sx=sx, sy=sy, flat=False,
                                   x_in_low=_low_half_is_index0())
    else:  # nhwc
        out_shape = jax.ShapeDtypeStruct((N, H, 2 * W), out_dtype)
        out_spec = pl.BlockSpec((Nb, tH, 2 * W), lambda b, h: (b, h, 0))
        kernel = functools.partial(_kernel_nhwc, sx=sx, sy=sy, flat=False,
                                   method=method)
    raw = pl.pallas_call(
        kernel,
        out_shape=out_shape,
        grid_spec=pltpu.PrefetchScalarGridSpec(
            num_scalar_prefetch=0, grid=grid,
            in_specs=in_specs, out_specs=out_spec),
        compiler_params=compiler_params,
    )(base_x, base_y, flow)
    if path == "nchw":
        return raw
    if path == "packed":
        return jax.lax.bitcast_convert_type(raw, jnp.bfloat16)  # (N, H, W, 2)
    return raw.reshape(N, H, W, 2)


# ---------------------------------------------------------------------------
# One-time probe: which in-kernel interleave formulation does this Mosaic
# version lower correctly?  (None -> fall back to NCHW kernel + XLA transpose.)
# ---------------------------------------------------------------------------
@functools.lru_cache(maxsize=None)
def _interleave_method(flat_mode: bool):
    W = 16 if flat_mode else 256
    shape = (1, 2, 8, W)
    total = shape[0] * shape[1] * shape[2] * shape[3]
    x = ((jnp.arange(total, dtype=jnp.float32) * 0.137) % 3.0 - 1.5).reshape(shape)
    ref = _reference(x)
    for method in ("reshape", "take"):
        try:
            out = jax.block_until_ready(
                _run(x, path="nhwc", method=method, out_dtype=jnp.float32))
            if out.shape == ref.shape and bool(
                    jnp.allclose(out, ref, atol=1e-5, rtol=1e-5)):
                return method
        except Exception:
            continue
    return None


# ---------------------------------------------------------------------------
# Public wrapper
# ---------------------------------------------------------------------------
def grid_generator(motion_vector: jax.Array, *, output_dtype=None,
                   channels_last: bool = True,
                   block_rows=None, block_batch=None) -> jax.Array:
    """Pallas equivalent of GridGenerator.forward.

    Args:
      motion_vector: (N, 2, H, W) flow field (NCHW, like the PyTorch module).
      output_dtype:  None -> same as input. jnp.bfloat16 (+channels_last) selects
                     the packed transpose-free fast path.
      channels_last: True -> (N, H, W, 2) like the module; False -> (N, 2, H, W)
                     with zero layout-conversion HBM traffic.
      block_rows / block_batch: optional tiling overrides (testing / tuning).
    """
    N, C, H, W = motion_vector.shape
    if C != 2:
        raise ValueError("GridGenerator expects a 2-channel flow field (N, 2, H, W)")

    in_dtype = jnp.dtype(motion_vector.dtype)
    out_dtype = jnp.dtype(output_dtype) if output_dtype is not None else in_dtype

    if not channels_last:
        return _run(motion_vector, path="nchw", out_dtype=out_dtype,
                    block_rows=block_rows, block_batch=block_batch)

    if out_dtype == jnp.dtype(jnp.bfloat16):
        return _run(motion_vector, path="packed", out_dtype=out_dtype,
                    block_rows=block_rows, block_batch=block_batch)

    flat = (W < 128) and (H > 1) and block_rows is None
    method = _interleave_method(flat)
    if method is not None:
        # Transpose-free full-precision NHWC (x/y interleaved in-kernel).
        return _run(motion_vector, path="nhwc", method=method, out_dtype=out_dtype,
                    block_rows=block_rows, block_batch=block_batch)

    # Fallback only if Mosaic can't lower the lane interleave: NCHW kernel +
    # XLA transpose (one extra HBM pass, same numbers as the fast path).
    out_nchw = _run(motion_vector, path="nchw", out_dtype=out_dtype,
                    block_rows=block_rows, block_batch=block_batch)
    return jnp.transpose(out_nchw, (0, 2, 3, 1))


# ---------------------------------------------------------------------------
# Pure-JAX reference (mirror of the PyTorch forward, float32)
# ---------------------------------------------------------------------------
def _reference(motion_vector: jax.Array) -> jax.Array:
    N, _, H, W = motion_vector.shape
    mv = motion_vector.astype(jnp.float32)
    horizontal = jnp.broadcast_to(
        jnp.linspace(-1.0, 1.0, W).reshape(1, 1, 1, W), (N, 1, H, W))
    vertical = jnp.broadcast_to(
        jnp.linspace(-1.0, 1.0, H).reshape(1, 1, H, 1), (N, 1, H, W))
    grid = jnp.concatenate([horizontal, vertical], axis=1)
    flow = jnp.concatenate(
        [mv[:, 0:1] / ((W - 1.0) / 2.0), mv[:, 1:2] / ((H - 1.0) / 2.0)], axis=1)
    out = grid + flow
    return jnp.transpose(out, (0, 2, 3, 1))


if __name__ == "__main__":
    key = jax.random.PRNGKey(0)
    N, C, H, W = 2, 2, 16, 16
    flow = jax.random.normal(key, (N, C, H, W), dtype=jnp.float32)
    ref = _reference(flow)

    # 1) Default path: f32 NHWC (small W -> flattened lane-dense kernel).
    out_f32 = jax.block_until_ready(grid_generator(flow))
    assert out_f32.shape == (N, H, W, 2), out_f32.shape
    assert out_f32.dtype == jnp.float32, out_f32.dtype
    assert jnp.allclose(out_f32, ref, atol=1e-5, rtol=1e-5), "f32 NHWC mismatch"

    # 2) Transpose-free NCHW output (consumer reads channels-first).
    out_nchw = jax.block_until_ready(grid_generator(flow, channels_last=False))
    assert out_nchw.shape == (N, 2, H, W), out_nchw.shape
    assert jnp.allclose(jnp.transpose(out_nchw, (0, 2, 3, 1)), ref,
                        atol=1e-5, rtol=1e-5), "NCHW mismatch"

    # 3) Packed bf16 fast path (lane-dense interleaved u32, native bf16 rounding).
    out_bf16 = jax.block_until_ready(
        grid_generator(flow, output_dtype=jnp.bfloat16))
    assert out_bf16.shape == (N, H, W, 2), out_bf16.shape
    assert out_bf16.dtype == jnp.bfloat16, out_bf16.dtype
    assert jnp.allclose(out_bf16.astype(jnp.float32), ref,
                        atol=2e-2, rtol=2e-2), "packed bf16 mismatch"

    # 4) Larger W: 2-D row-tiled grid with explicit tiling overrides.
    N2, H2, W2 = 3, 48, 256
    flow2 = jax.random.normal(jax.random.PRNGKey(1), (N2, 2, H2, W2),
                              dtype=jnp.float32)
    ref2 = _reference(flow2)
    out2 = jax.block_until_ready(
        grid_generator(flow2, block_rows=16, block_batch=1))
    assert out2.shape == (N2, H2, W2, 2), out2.shape
    assert jnp.allclose(out2, ref2, atol=1e-5, rtol=1e-5), "tiled case mismatch"

    # 5) Same shape with chip-aware auto-tiling (exercises the big-block path).
    out3 = jax.block_until_ready(grid_generator(flow2))
    assert out3.shape == (N2, H2, W2, 2), out3.shape
    assert jnp.allclose(out3, ref2, atol=1e-5, rtol=1e-5), "auto-tiled mismatch"

    print("KERNEL_OK")
</pallas_src>

<mosaic_0001>
module attributes {stable_mosaic.version = 11 : i64} {
  func.func @_kernel_nhwc(%arg0: i32, %arg1: i32, %arg2: memref<1x128xf32, #tpu.memory_space<vmem>>, %arg3: memref<1x128xf32, #tpu.memory_space<vmem>>, %arg4: memref<1x2x128xf32, #tpu.memory_space<vmem>>, %arg5: memref<1x1x256xf32, #tpu.memory_space<vmem>>) attributes {dimension_semantics = [#tpu.dimension_semantics<parallel>, #tpu.dimension_semantics<parallel>], iteration_bounds = array<i64: 1, 1>, scalar_prefetch = 0 : i64, scratch_operands = 0 : i64, tpu.core_type = #tpu.core_type<tc>, window_params = [{transform_indices = @transform_0, window_bounds = array<i64: 1, 128>}, {transform_indices = @transform_1, window_bounds = array<i64: 1, 128>}, {transform_indices = @transform_2, window_bounds = array<i64: 1, 2, 128>}, {transform_indices = @transform_3, window_bounds = array<i64: 1, 1, 256>}]} {
    %c0 = arith.constant 0 : index
    %c0_0 = arith.constant 0 : index
    %c0_1 = arith.constant 0 : index
    %0 = vector.load %arg4[%c0, %c0_0, %c0_1] : memref<1x2x128xf32, #tpu.memory_space<vmem>>, vector<1x1x128xf32>
    %1 = vector.shape_cast %0 : vector<1x1x128xf32> to vector<1x128xf32>
    %c0_2 = arith.constant 0 : index
    %c1 = arith.constant 1 : index
    %c0_3 = arith.constant 0 : index
    %2 = vector.load %arg4[%c0_2, %c1, %c0_3] : memref<1x2x128xf32, #tpu.memory_space<vmem>>, vector<1x1x128xf32>
    %3 = vector.shape_cast %2 : vector<1x1x128xf32> to vector<1x128xf32>
    %c0_4 = arith.constant 0 : index
    %c0_5 = arith.constant 0 : index
    %4 = vector.load %arg2[%c0_4, %c0_5] : memref<1x128xf32, #tpu.memory_space<vmem>>, vector<1x128xf32>
    %cst = arith.constant 0.13333334 : f32
    %5 = vector.broadcast %cst : f32 to vector<1x128xf32>
    %6 = arith.mulf %1, %5 : vector<1x128xf32>
    %7 = arith.addf %4, %6 : vector<1x128xf32>
    %c0_6 = arith.constant 0 : index
    %c0_7 = arith.constant 0 : index
    %8 = vector.load %arg3[%c0_6, %c0_7] : memref<1x128xf32, #tpu.memory_space<vmem>>, vector<1x128xf32>
    %cst_8 = arith.constant 0.285714298 : f32
    %9 = vector.broadcast %cst_8 : f32 to vector<1x128xf32>
    %10 = arith.mulf %3, %9 : vector<1x128xf32>
    %11 = arith.addf %8, %10 : vector<1x128xf32>
    %12 = vector.shape_cast %7 : vector<1x128xf32> to vector<1x128x1xf32>
    %13 = vector.shape_cast %11 : vector<1x128xf32> to vector<1x128x1xf32>
    %14 = tpu.concatenate %12, %13 in 2 : vector<1x128x1xf32>, vector<1x128x1xf32> -> vector<1x128x2xf32>
    %15 = vector.shape_cast %14 : vector<1x128x2xf32> to vector<1x256xf32>
    %c0_9 = arith.constant 0 : index
    %c0_10 = arith.constant 0 : index
    %c0_11 = arith.constant 0 : index
    %16 = vector.load %arg5[%c0_9, %c0_10, %c0_11] : memref<1x1x256xf32, #tpu.memory_space<vmem>>, vector<1x1x256xf32>
    %17 = vector.shape_cast %16 : vector<1x1x256xf32> to vector<1x256xf32>
    %18 = vector.shape_cast %15 : vector<1x256xf32> to vector<1x1x256xf32>
    tpu.vector_store %arg5[%c0_9, %c0_10, %c0_11], %18 {strides = array<i32>} : memref<1x1x256xf32, #tpu.memory_space<vmem>>, vector<1x1x256xf32>,
    return
  }
  func.func @transform_0(%arg0: i32, %arg1: i32) -> (i32, i32) {
    %c0_i32 = arith.constant 0 : i32
    %c0_i32_0 = arith.constant 0 : i32
    return %c0_i32, %arg1 : i32, i32
  }
  func.func @transform_1(%arg0: i32, %arg1: i32) -> (i32, i32) {
    %c0_i32 = arith.constant 0 : i32
    %c0_i32_0 = arith.constant 0 : i32
    return %c0_i32, %arg1 : i32, i32
  }
  func.func @transform_2(%arg0: i32, %arg1: i32) -> (i32, i32, i32) {
    %c0_i32 = arith.constant 0 : i32
    %c0_i32_0 = arith.constant 0 : i32
    return %arg0, %c0_i32, %arg1 : i32, i32, i32
  }
  func.func @transform_3(%arg0: i32, %arg1: i32) -> (i32, i32, i32) {
    %c0_i32 = arith.constant 0 : i32
    %c0_i32_0 = arith.constant 0 : i32
    return %arg0, %c0_i32, %arg1 : i32, i32, i32
  }
}

module attributes {stable_mosaic.version = 11 : i64} {
  func.func @_kernel_nchw(%arg0: i32, %arg1: i32, %arg2: memref<1x256xf32, #tpu.memory_space<vmem>>, %arg3: memref<1x256xf32, #tpu.memory_space<vmem>>, %arg4: memref<1x2x256xf32, #tpu.memory_space<vmem>>, %arg5: memref<1x2x256xf32, #tpu.memory_space<vmem>>) attributes {dimension_semantics = [#tpu.dimension_semantics<parallel>, #tpu.dimension_semantics<parallel>], iteration_bounds = array<i64: 2, 1>, scalar_prefetch = 0 : i64, scratch_operands = 0 : i64, tpu.core_type = #tpu.core_type<tc>, window_params = [{transform_indices = @transform_0, window_bounds = array<i64: 1, 256>}, {transform_indices = @transform_1, window_bounds = array<i64: 1, 256>}, {transform_indices = @transform_2, window_bounds = array<i64: 1, 2, 256>}, {transform_indices = @transform_3, window_bounds = array<i64: 1, 2, 256>}]} {
    %c0 = arith.constant 0 : index
    %c0_0 = arith.constant 0 : index
    %c0_1 = arith.constant 0 : index
    %0 = vector.load %arg4[%c0, %c0_0, %c0_1] : memref<1x2x256xf32, #tpu.memory_space<vmem>>, vector<1x1x256xf32>
    %1 = vector.shape_cast %0 : vector<1x1x256xf32> to vector<1x256xf32>
    %c0_2 = arith.constant 0 : index
    %c1 = arith.constant 1 : index
    %c0_3 = arith.constant 0 : index
    %2 = vector.load %arg4[%c0_2, %c1, %c0_3] : memref<1x2x256xf32, #tpu.memory_space<vmem>>, vector<1x1x256xf32>
    %3 = vector.shape_cast %2 : vector<1x1x256xf32> to vector<1x256xf32>
    %c0_4 = arith.constant 0 : index
    %c0_5 = arith.constant 0 : index
    %4 = vector.load %arg2[%c0_4, %c0_5] : memref<1x256xf32, #tpu.memory_space<vmem>>, vector<1x256xf32>
    %cst = arith.constant 0.13333334 : f32
    %5 = vector.broadcast %cst : f32 to vector<1x256xf32>
    %6 = arith.mulf %1, %5 : vector<1x256xf32>
    %7 = arith.addf %4, %6 : vector<1x256xf32>
    %c0_6 = arith.constant 0 : index
    %c0_7 = arith.constant 0 : index
    %8 = vector.load %arg3[%c0_6, %c0_7] : memref<1x256xf32, #tpu.memory_space<vmem>>, vector<1x256xf32>
    %cst_8 = arith.constant 0.13333334 : f32
    %9 = vector.broadcast %cst_8 : f32 to vector<1x256xf32>
    %10 = arith.mulf %3, %9 : vector<1x256xf32>
    %11 = arith.addf %8, %10 : vector<1x256xf32>
    %c0_9 = arith.constant 0 : index
    %c0_10 = arith.constant 0 : index
    %c0_11 = arith.constant 0 : index
    %12 = vector.load %arg5[%c0_9, %c0_10, %c0_11] : memref<1x2x256xf32, #tpu.memory_space<vmem>>, vector<1x1x256xf32>
    %13 = vector.shape_cast %12 : vector<1x1x256xf32> to vector<1x256xf32>
    %14 = vector.shape_cast %7 : vector<1x256xf32> to vector<1x1x256xf32>
    tpu.vector_store %arg5[%c0_9, %c0_10, %c0_11], %14 {strides = array<i32>} : memref<1x2x256xf32, #tpu.memory_space<vmem>>, vector<1x1x256xf32>,
    %c0_12 = arith.constant 0 : index
    %c1_13 = arith.constant 1 : index
    %c0_14 = arith.constant 0 : index
    %15 = vector.load %arg5[%c0_12, %c1_13, %c0_14] : memref<1x2x256xf32, #tpu.memory_space<vmem>>, vector<1x1x256xf32>
    %16 = vector.shape_cast %15 : vector<1x1x256xf32> to vector<1x256xf32>
    %17 = vector.shape_cast %11 : vector<1x256xf32> to vector<1x1x256xf32>
    tpu.vector_store %arg5[%c0_12, %c1_13, %c0_14], %17 {strides = array<i32>} : memref<1x2x256xf32, #tpu.memory_space<vmem>>, vector<1x1x256xf32>,
    return
  }
  func.func @transform_0(%arg0: i32, %arg1: i32) -> (i32, i32) {
    %c0_i32 = arith.constant 0 : i32
    %c0_i32_0 = arith.constant 0 : i32
    return %c0_i32, %arg1 : i32, i32
  }
  func.func @transform_1(%arg0: i32, %arg1: i32) -> (i32, i32) {
    %c0_i32 = arith.constant 0 : i32
    %c0_i32_0 = arith.constant 0 : i32
    return %c0_i32, %arg1 : i32, i32
  }
  func.func @transform_2(%arg0: i32, %arg1: i32) -> (i32, i32, i32) {
    %c0_i32 = arith.constant 0 : i32
    %c0_i32_0 = arith.constant 0 : i32
    return %arg0, %c0_i32, %arg1 : i32, i32, i32
  }
  func.func @transform_3(%arg0: i32, %arg1: i32) -> (i32, i32, i32) {
    %c0_i32 = arith.constant 0 : i32
    %c0_i32_0 = arith.constant 0 : i32
    return %arg0, %c0_i32, %arg1 : i32, i32, i32
  }
}

</mosaic_0001>

<bundles_post_ra>
// kernel: tpu_custom_call.1
= control target key start
LH: loop header
LB: loop body
LE: loop exit
PB: predicated region body
PF: predicated region fallthrough
CT: control target
= control target key end

     0   :  { %8 = vsyncpa [#allocation3], 0  ;;  %s2522_s0 = inlined_call_operand.hbm [shape: f32[1,128], index: 0, kind: input, shape index: {}]   ;;  %s2523_s1 = inlined_call_operand.hbm [shape: f32[1,128], index: 1, kind: input, shape index: {}]   ;;  %s2524_s2 = inlined_call_operand.hbm [shape: f32[1,2,128], index: 2, kind: input, shape index: {}]   ;;  %s2525_s3 = inlined_call_operand.hbm [shape: f32[1,1,256], index: 3, kind: output, shape index: {}]  }
   0x1   :  { %9 = vsyncpa [#allocation6], 0  ;;  %s27_s14 = sshll.u32 %s2523_s1, 4  ;;  %s28_s14 = int_to_ptr.hbm [resolvable:$true] %s27_s14 }
   0x2   :  { %10 = vsyncpa [#allocation4], 0  ;;  %s1810_s15 = smov [#allocation5]   ;;  %s16_s19 = sshll.u32 %s2522_s0, 4  ;;  %s17_s19 = int_to_ptr.hbm [resolvable:$true] %s16_s19 }
   0x3   :  { %s29_s16 = sshll.u32 %s1810_s15, 4  ;;  %s1811_s20 = smov [#allocation2]   ;;  %s30_s16 = int_to_ptr.vmem [resolvable:$true] %s29_s16 }
   0x4   :  { %32 = dma.hbm_to_vmem [thread:$0]  %s28_s14, 16, %s30_s16, [#allocation6]  }
   0x5   :  { %s18_s21 = sshll.u32 %s1811_s20, 4  ;;  %s38_s24 = sshll.u32 %s2524_s2, 4  ;;  %s19_s21 = int_to_ptr.vmem [resolvable:$true] %s18_s21  ;;  %s39_s24 = int_to_ptr.hbm [resolvable:$true] %s38_s24 }
   0x6   :  { %21 = dma.hbm_to_vmem [thread:$0]  %s17_s19, 16, %s19_s21, [#allocation3]  }
   0x7   :  { %s1812_s1 = smov [#allocation7]  }
   0x8   :  { %s40_s25 = sshll.u32 %s1812_s1, 4  ;;  %s41_s25 = int_to_ptr.vmem [resolvable:$true] %s40_s25 }
   0x9   :  { %43 = dma.hbm_to_vmem [thread:$0]  %s39_s24, 32, %s41_s25, [#allocation6]  }
   0xa   :  { %1804 = dma.done.wait [#allocation3], 16  }
   0xb   :  { %1805 = vsyncadd [#allocation3], 4294967280 }
   0xc   :  { %1806 = dma.done.wait [#allocation6], 48  }
   0xd   :  { %1807 = vsyncadd [#allocation6], 4294967248  ;;  %v65_v0 = vlaneseq  ;;  %v56_v4 = vld [vmem:[#allocation7] sm:$0x1]  ;;  %v58_v5 = vld [vmem:[#allocation2] sm:$0x1] }
   0xe   :  { %v59_v6 = vmul.f32 0.13333334, %v56_v4  ;;  %v57_v18 = vld [vmem:[#allocation7 + $0x1] sm:$0x1]  ;;  %v61_v22 = vld [vmem:[#allocation5] sm:$0x1] }
   0xf   :  { %v66_v1 = vshrl.u32 %v65_v0, 7  ;;  %v62_v21 = vmul.f32 0.2857143, %v57_v18  ;;  %v1813_v38 = vmov 1983009808   ;;  %vm258_vm0 = vcmask 7168  }
  0x10   :  { %v60_v7 = vadd.f32 %v59_v6, %v58_v5  ;;  %v279_v39 = vunpack.c.l.s4 %v1813_v38  ;;  %v1814_v40 = vmov 1934713408   ;;  %s1815_s0 = smov 32   ;;  %s1816_s2 = smov 16   ;;  %vm276_vm1 = vcmask 1047556  }
  0x11   :  { %1675 = vset.pattern.permute.xlu0 %v66_v1  ;;  %v1909_v2 = vadd.s32 32, %v66_v1  ;;  %v79_v3 = vadd.s32 16, %v66_v1  ;;  %v97_v9 = vadd.s32 40, %v66_v1  ;;  %v85_v10 = vadd.s32 24, %v66_v1  ;;  %s1817_s26 = smov 18   ;;  %s1818_s27 = smov 24  }
  0x12   :  { %v64_v8 = vperm.slane %v60_v7, 0  ;;  %v73_v11 = vadd.s32 8, %v66_v1  ;;  %v109_v12 = vadd.s32 56, %v66_v1  ;;  %v103_v13 = vadd.s32 48, %v66_v1  ;;  %s1819_s28 = smov 4   ;;  %s1820_s29 = smov 2  }
  0x13   :  { %1679 = vset.pattern.permute.xlu2 %v1909_v2  ;;  %1677 = vset.pattern.permute.xlu1 %v79_v3  ;;  %v115_v14 = vadd.s32 64, %v66_v1  ;;  %v127_v15 = vadd.s32 80, %v66_v1  ;;  %v121_v16 = vadd.s32 72, %v66_v1  ;;  %v145_v17 = vadd.s32 104, %v66_v1  ;;  %s1821_s30 = smov 6   ;;  %s1822_s4 = smov 10  }
  0x14   :  { %v139_v19 = vadd.s32 96, %v66_v1  ;;  %v133_v20 = vadd.s32 88, %v66_v1  ;;  %v63_v23 = vadd.f32 %v62_v21, %v61_v22  ;;  %v157_v25 = vadd.s32 120, %v66_v1  ;;  %s1823_s5 = smov 8   ;;  %s1824_s6 = smov 12  }
  0x15   :  { %v151_v26 = vadd.s32 112, %v66_v1  ;;  %v289_v41 = vunpack.c.l.s4 %v1814_v40  ;;  %v1948_v43 = vunpack.c.0.s8 %v279_v39  ;;  %s1825_s7 = smov 22   ;;  %s1826_s8 = smov 20   ;;  %vm1388_vm2 = vcmask 15360  }
  0x16   :  { %v1912_v24 = vperm.slane %v63_v23, 0  ;;  %s1827_s9 = smov 30   ;;  %s1828_s10 = smov 28   ;;  %vm1390_vm3 = vcmask 31744   ;;  %vm1392_vm4 = vcmask 48128   ;;  %vm1394_vm5 = vcmask 64512  }
  0x17   :  { %v1952_v46 = vunpack.c.0.s8 %v289_v41  ;;  %s1829_s11 = smov 26   ;;  %s1830_s12 = smov 36   ;;  %vm1396_vm6 = vcmask 80896   ;;  %vm1398_vm7 = vcmask 97280   ;;  %vm1400_vm8 = vcmask 113664  }
  0x18   :  { %s1831_s13 = smov 14   ;;  %s1832_s14 = smov 34   ;;  %vm1402_vm9 = vcmask 130048   ;;  %vm1404_vm10 = vcmask 146432   ;;  %vm2589_vm11 = vcmask 162816   ;;  %vm2559_vm12 = vcmask 179200  }
  0x19   :  { %69 = vperm.xlu0 %1675, %v64_v8   ;;  %s1833_s15 = smov 42   ;;  %s1834_s16 = smov 38   ;;  %vm2553_vm13 = vcmask 195584   ;;  %vm2554_vm14 = vcmask 211968   ;;  %vm2558_vm15 = vcmask 228352  }
  0x1a   :  { %s1835_s17 = smov 40   ;;  %s1836_s18 = smov 48  }
  0x1b   :  { %93 = vperm.xlu2 %1679, %v64_v8   ;;  %81 = vperm.xlu1 %1677, %v64_v8   ;;  %s1837_s19 = smov 44   ;;  %s1838_s20 = smov 46  }
  0x1c   :  { %s1839_s21 = smov 54   ;;  %s1840_s22 = smov 50  }
  0x1d   :  { %s1841_s23 = smov 52   ;;  %s2526_s24 = smov 60  }
  0x1e   :  { %s2528_s1 = smov 56   ;;  %s2527_s25 = smov 58  }
  0x21   :  { %1676 = vset.pattern.permute.xlu0 %v73_v11 }
  0x23   :  { %1680 = vset.pattern.permute.xlu2 %v97_v9  ;;  %1678 = vset.pattern.permute.xlu1 %v85_v10 }
  0x29   :  { %75 = vperm.xlu0 %1676, %v64_v8  }
  0x2b   :  { %99 = vperm.xlu2 %1680, %v64_v8   ;;  %87 = vperm.xlu1 %1678, %v64_v8  }
  0x31   :  { %1683 = vset.pattern.permute.xlu0 %v115_v14 }
  0x33   :  { %1682 = vset.pattern.permute.xlu2 %v109_v12  ;;  %1681 = vset.pattern.permute.xlu1 %v103_v13 }
  0x39   :  { %117 = vperm.xlu0 %1683, %v64_v8  }
  0x3b   :  { %111 = vperm.xlu2 %1682, %v64_v8   ;;  %105 = vperm.xlu1 %1681, %v64_v8  }
  0x41   :  { %1688 = vset.pattern.permute.xlu0 %v145_v17 }
  0x43   :  { %1685 = vset.pattern.permute.xlu2 %v127_v15  ;;  %1684 = vset.pattern.permute.xlu1 %v121_v16 }
  0x49   :  { %147 = vperm.xlu0 %1688, %v64_v8  }
  0x4b   :  { %129 = vperm.xlu2 %1685, %v64_v8   ;;  %123 = vperm.xlu1 %1684, %v64_v8  }
  0x51   :  { %1693 = vset.pattern.permute.xlu0 %v79_v3 }
  0x53   :  { %1687 = vset.pattern.permute.xlu2 %v139_v19  ;;  %1686 = vset.pattern.permute.xlu1 %v133_v20 }
  0x59   :  { %178 = vperm.xlu0 %1693, %v1912_v24  }
  0x5b   :  { %141 = vperm.xlu2 %1687, %v64_v8   ;;  %135 = vperm.xlu1 %1686, %v64_v8  }
  0x61   :  { %1698 = vset.pattern.permute.xlu0 %v109_v12 }
  0x63   :  { %1690 = vset.pattern.permute.xlu2 %v157_v25  ;;  %1689 = vset.pattern.permute.xlu1 %v151_v26 }
  0x69   :  { %208 = vperm.xlu0 %1698, %v1912_v24  }
  0x6b   :  { %159 = vperm.xlu2 %1690, %v64_v8   ;;  %153 = vperm.xlu1 %1689, %v64_v8  }
  0x71   :  { %1703 = vset.pattern.permute.xlu0 %v139_v19 }
  0x73   :  { %1692 = vset.pattern.permute.xlu2 %v73_v11  ;;  %1691 = vset.pattern.permute.xlu1 %v66_v1 }
  0x75   :  { %v1924_v27 = vpop.permute.xlu2 %93 }
  0x79   :  { %238 = vperm.xlu0 %1703, %v1912_v24  }
  0x7b   :  { %172 = vperm.xlu2 %1692, %v1912_v24   ;;  %166 = vperm.xlu1 %1691, %v1912_v24  }
  0x81   :  { %1707 = vset.pattern.permute.xlu0 %v157_v25 }
  0x83   :  { %1695 = vset.pattern.permute.xlu2 %v1909_v2  ;;  %1694 = vset.pattern.permute.xlu1 %v85_v10 }
  0x85   :  { %v1926_v29 = vpop.permute.xlu2 %99 }
  0x8b   :  { %190 = vperm.xlu2 %1695, %v1912_v24   ;;  %184 = vperm.xlu1 %1694, %v1912_v24   ;;  %v70_v28 = vpop.permute.xlu0 %69 }
  0x8d   :  { %v82_v34 = vpop.permute.xlu1 %81 }
  0x93   :  { %1697 = vset.pattern.permute.xlu2 %v103_v13  ;;  %1696 = vset.pattern.permute.xlu1 %v97_v9 }
  0x95   :  { %v1930_v31 = vpop.permute.xlu2 %111 }
  0x9b   :  { %202 = vperm.xlu2 %1697, %v1912_v24   ;;  %196 = vperm.xlu1 %1696, %v1912_v24   ;;  %v76_v30 = vpop.permute.xlu0 %75 }
  0x9d   :  { %v1942_v37 = vpop.permute.xlu1 %87 }
  0xa3   :  { %1700 = vset.pattern.permute.xlu2 %v121_v16  ;;  %1699 = vset.pattern.permute.xlu1 %v115_v14 }
  0xa5   :  { %v1932_v32 = vpop.permute.xlu2 %129 }
  0xab   :  { %220 = vperm.xlu2 %1700, %v1912_v24   ;;  %214 = vperm.xlu1 %1699, %v1912_v24   ;;  %v1934_v33 = vpop.permute.xlu0 %117 }
  0xad   :  { %v1950_v44 = vpop.permute.xlu1 %105 }
  0xb3   :  { %1702 = vset.pattern.permute.xlu2 %v133_v20  ;;  %1701 = vset.pattern.permute.xlu1 %v127_v15 }
  0xb5   :  { %v1938_v35 = vpop.permute.xlu2 %141 }
  0xbb   :  { %232 = vperm.xlu2 %1702, %v1912_v24   ;;  %226 = vperm.xlu1 %1701, %v1912_v24   ;;  %v1940_v36 = vpop.permute.xlu0 %147 }
  0xbd   :  { %v1967_v50 = vpop.permute.xlu1 %123 }
  0xc3   :  { %1705 = vset.pattern.permute.xlu2 %v151_v26  ;;  %1704 = vset.pattern.permute.xlu1 %v145_v17 }
  0xc5   :  { %v1946_v42 = vpop.permute.xlu2 %159 }
  0xcb   :  { %250 = vperm.xlu2 %1705, %v1912_v24   ;;  %244 = vperm.xlu1 %1704, %v1912_v24   ;;  %v179_v45 = vpop.permute.xlu0 %178 }
  0xcc   :  { %v1955_v47 = vsel %vm258_vm0, %v82_v34, %v179_v45 }
  0xcd   :  { %v1959_v48 = vperm.slane %v1955_v47, %v1948_v43  ;;  %v1974_v55 = vpop.permute.xlu1 %135 }
  0xcf   :  { %v1963_v49 = vperm.slane %v1959_v48, %v1952_v46  ;;  %v362_v38 = vrot.slane %v1959_v48, 4 }
  0xd3   :  { %1706 = vset.pattern.permute.xlu1 %v157_v25  ;;  %945 = vrot.lane.b32.xlu2 %v1963_v49, %s1815_s0 }
  0xd5   :  { %v173_v51 = vpop.permute.xlu2 %172 }
  0xd6   :  { %v260_v52 = vsel %vm258_vm0, %v76_v30, %v173_v51  ;;  %v352_v30 = vrot.slane %v1955_v47, 4  ;;  %v363_v47 = vsel %vm276_vm1, 0.0, %v362_v38 }
  0xd7   :  { %v319_v53 = vperm.slane %v260_v52, %v1948_v43  ;;  %v314_v56 = vrot.slane %v260_v52, 4  ;;  %v371_v52 = vperm.slane %v363_v47, %v1952_v46 }
  0xd8   :  { %v353_v40 = vsel %vm276_vm1, 0.0, %v352_v30 }
  0xd9   :  { %v329_v54 = vperm.slane %v319_v53, %v1952_v46  ;;  %v315_v58 = vsel %vm276_vm1, 0.0, %v314_v56  ;;  %v324_v13 = vrot.slane %v319_v53, 4  ;;  %v361_v45 = vperm.slane %v353_v40, %v1948_v43 }
  0xda   :  { %v323_v60 = vperm.slane %v315_v58, %v1948_v43  ;;  %v382_v56 = vrot.slane %v1963_v49, 4 }
  0xdb   :  { %256 = vperm.xlu1 %1706, %v1912_v24   ;;  %913 = vrot.lane.b32.xlu0 %v329_v54, %s1816_s2  ;;  %v344_v57 = vrot.slane %v329_v54, 4  ;;  %v325_v19 = vsel %vm276_vm1, 0.0, %v324_v13  ;;  %v377_v53 = vperm.slane %v361_v45, %v1952_v46 }
  0xdc   :  { %v339_v62 = vperm.slane %v323_v60, %v1952_v46  ;;  %v334_v17 = vrot.slane %v323_v60, 4  ;;  %v333_v22 = vperm.slane %v325_v19, %v1952_v46 }
  0xdd   :  { %v345_v59 = vsel %vm276_vm1, 0.0, %v344_v57  ;;  %v1980_v61 = vpop.permute.xlu1 %153  ;;  %v386_v58 = vrot.slane %v377_v53, 4 }
  0xde   :  { %v335_v23 = vsel %vm276_vm1, 0.0, %v334_v17  ;;  %v346_v26 = vrot.slane %v333_v22, 4  ;;  %v348_v41 = vrot.slane %v339_v62, 4 }
  0xdf   :  { %v343_v25 = vperm.slane %v335_v23, %v1952_v46 }
  0xe0   :  { %v347_v34 = vsel %vm276_vm1, 0.0, %v346_v26  ;;  %v349_v51 = vsel %vm276_vm1, 0.0, %v348_v41 }
  0xe3   :  { %917 = vrot.lane.b32.xlu1 %v345_v59, %s1817_s26 }
  0xeb   :  { %929 = vrot.lane.b32.xlu1 %v339_v62, %s1818_s27  ;;  %v383_v62 = vsel %vm276_vm1, 0.0, %v382_v56 }
  0xed   :  { %v167_v63 = vpop.permute.xlu1 %166 }
  0xee   :  { %v259_v1 = vsel %vm258_vm0, %v70_v28, %v167_v63  ;;  %v350_v28 = vrot.slane %v343_v25, 4  ;;  %v372_v63 = vrot.slane %v361_v45, 4 }
  0xef   :  { %v275_v2 = vrot.slane %v259_v1, 4  ;;  %v281_v3 = vperm.slane %v259_v1, %v1948_v43  ;;  %v387_v1 = vsel %vm276_vm1, 0.0, %v386_v58 }
  0xf0   :  { %v351_v39 = vsel %vm276_vm1, 0.0, %v350_v28 }
  0xf1   :  { %v277_v4 = vsel %vm276_vm1, 0.0, %v275_v2  ;;  %v286_v5 = vrot.slane %v281_v3, 4  ;;  %v1988_v6 = vperm.slane %v281_v3, %v1952_v46  ;;  %v373_v2 = vsel %vm276_vm1, 0.0, %v372_v63 }
  0xf2   :  { %v285_v7 = vperm.slane %v277_v4, %v1948_v43 }
  0xf3   :  { %v287_v8 = vsel %vm276_vm1, 0.0, %v286_v5  ;;  %v306_v9 = vrot.slane %v1988_v6, 4  ;;  %v381_v5 = vperm.slane %v373_v2, %v1952_v46 }
  0xf4   :  { %v295_v10 = vperm.slane %v287_v8, %v1952_v46  ;;  %v301_v12 = vperm.slane %v285_v7, %v1952_v46  ;;  %v296_v16 = vrot.slane %v285_v7, 4  ;;  %v191_v8 = vpop.permute.xlu2 %190 }
  0xf5   :  { %v307_v11 = vsel %vm276_vm1, 0.0, %v306_v9  ;;  %v263_v19 = vsel %vm258_vm0, %v1924_v27, %v191_v8 }
  0xf6   :  { %889 = vrot.lane.b32.xlu0 %v295_v10, %s1819_s28  ;;  %885 = vrot.lane.b32.xlu2 %v307_v11, %s1820_s29  ;;  %v308_v14 = vrot.slane %v295_v10, 4  ;;  %v310_v18 = vrot.slane %v301_v12, 4  ;;  %v297_v20 = vsel %vm276_vm1, 0.0, %v296_v16 }
  0xf7   :  { %v305_v24 = vperm.slane %v297_v20, %v1952_v46 }
  0xf8   :  { %v309_v15 = vsel %vm276_vm1, 0.0, %v308_v14  ;;  %v311_v21 = vsel %vm276_vm1, 0.0, %v310_v18 }
  0xf9   :  { %893 = vrot.lane.b32.xlu1 %v309_v15, %s1821_s30  ;;  %v312_v54 = vrot.slane %v305_v24, 4 }
  0xfb   :  { %v313_v60 = vsel %vm276_vm1, 0.0, %v312_v54 }
  0xfc   :  { %v2048_v16 = vpop.permute.xlu2 %202 }
  0xfd   :  { %v185_v48 = vpop.permute.xlu1 %184 }
  0xfe   :  { %901 = vrot.lane.b32.xlu0 %v311_v21, %s1822_s4  ;;  %897 = vrot.lane.b32.xlu2 %v301_v12, %s1823_s5  ;;  %v262_v57 = vsel %vm258_vm0, %v1942_v37, %v185_v48  ;;  %v384_v37 = vrot.slane %v371_v52, 4  ;;  %v388_v12 = vrot.slane %v381_v5, 4  ;;  %v433_v21 = vperm.slane %v263_v19, %v1948_v43 }
  0xff   :  { %v395_v59 = vperm.slane %v262_v57, %v1948_v43  ;;  %v390_v3 = vrot.slane %v262_v57, 4 }
 0x100   :  { %v385_v4 = vsel %vm276_vm1, 0.0, %v384_v37  ;;  %v389_v15 = vsel %vm276_vm1, 0.0, %v388_v12  ;;  %v443_v30 = vperm.slane %v433_v21, %v1952_v46  ;;  %v438_v45 = vrot.slane %v433_v21, 4 }
 0x101   :  { %905 = vrot.lane.b32.xlu1 %v305_v24, %s1824_s6  ;;  %v400_v49 = vrot.slane %v395_v59, 4  ;;  %v405_v9 = vperm.slane %v395_v59, %v1952_v46  ;;  %v391_v11 = vsel %vm276_vm1, 0.0, %v390_v3 }
 0x102   :  { %v399_v13 = vperm.slane %v391_v11, %v1948_v43  ;;  %v439_v54 = vsel %vm276_vm1, 0.0, %v438_v45 }
 0x103   :  { %v401_v7 = vsel %vm276_vm1, 0.0, %v400_v49  ;;  %v420_v20 = vrot.slane %v405_v9, 4  ;;  %v447_v57 = vperm.slane %v439_v54, %v1952_v46 }
 0x104   :  { %v409_v10 = vperm.slane %v401_v7, %v1952_v46  ;;  %v410_v18 = vrot.slane %v399_v13, 4  ;;  %v415_v24 = vperm.slane %v399_v13, %v1952_v46 }
 0x105   :  { %v421_v23 = vsel %vm276_vm1, 0.0, %v420_v20  ;;  %v2060_v26 = vpop.permute.xlu2 %220  ;;  %v460_v49 = vrot.slane %v447_v57, 4 }
 0x106   :  { %925 = vrot.lane.b32.xlu0 %v347_v34, %s1825_s7  ;;  %921 = vrot.lane.b32.xlu2 %v333_v22, %s1826_s8  ;;  %v422_v14 = vrot.slane %v409_v10, 4  ;;  %v411_v22 = vsel %vm276_vm1, 0.0, %v410_v18  ;;  %v424_v34 = vrot.slane %v415_v24, 4  ;;  %v209_v18 = vpop.permute.xlu0 %208 }
 0x107   :  { %v419_v28 = vperm.slane %v411_v22, %v1952_v46  ;;  %v265_v22 = vsel %vm258_vm0, %v1950_v44, %v2048_v16 }
 0x108   :  { %v423_v17 = vsel %vm276_vm1, 0.0, %v422_v14  ;;  %v425_v41 = vsel %vm276_vm1, 0.0, %v424_v34 }
 0x109   :  { %941 = vrot.lane.b32.xlu1 %v351_v39, %s1827_s9  ;;  %v458_v39 = vrot.slane %v443_v30, 4 }
 0x10b   :  { %v459_v48 = vsel %vm276_vm1, 0.0, %v458_v39 }
 0x10d   :  { %v197_v27 = vpop.permute.xlu1 %196 }
 0x10e   :  { %937 = vrot.lane.b32.xlu0 %v343_v25, %s1828_s10  ;;  %933 = vrot.lane.b32.xlu2 %v349_v51, %s1829_s11  ;;  %v428_v25 = vrot.slane %v263_v19, 4 }
 0x110   :  { %v429_v38 = vsel %vm276_vm1, 0.0, %v428_v25 }
 0x111   :  { %953 = vrot.lane.b32.xlu1 %v371_v52, %s1830_s12  ;;  %v437_v40 = vperm.slane %v429_v38, %v1948_v43 }
 0x113   :  { %v448_v52 = vrot.slane %v437_v40, 4 }
 0x115   :  { %v2070_v47 = vpop.permute.xlu2 %232  ;;  %v449_v58 = vsel %vm276_vm1, 0.0, %v448_v52 }
 0x116   :  { %909 = vrot.lane.b32.xlu2 %v313_v60, %s1831_s13  ;;  %949 = vrot.lane.b32.xlu0 %v383_v62, %s1832_s14  ;;  %v453_v62 = vperm.slane %v437_v40, %v1952_v46  ;;  %v457_v63 = vperm.slane %v449_v58, %v1952_v46  ;;  %v504_v40 = vrot.slane %v265_v22, 4 }
 0x118   :  { %v464_v2 = vrot.slane %v457_v63, 4 }
 0x119   :  { %965 = vrot.lane.b32.xlu1 %v387_v1, %s1833_s15  ;;  %v264_v1 = vsel %vm258_vm0, %v1926_v29, %v197_v27 }
 0x11a   :  { %v471_v37 = vperm.slane %v264_v1, %v1948_v43  ;;  %v466_v3 = vrot.slane %v264_v1, 4  ;;  %v465_v8 = vsel %vm276_vm1, 0.0, %v464_v2 }
 0x11c   :  { %v476_v7 = vrot.slane %v471_v37, 4  ;;  %v481_v14 = vperm.slane %v471_v37, %v1952_v46 }
 0x11d   :  { %v2074_v51 = vpop.permute.xlu1 %214 }
 0x11e   :  { %957 = vrot.lane.b32.xlu2 %v385_v4, %s1834_s16  ;;  %961 = vrot.lane.b32.xlu0 %v377_v53, %s1835_s17  ;;  %v426_v53 = vrot.slane %v419_v28, 4  ;;  %v461_v4 = vsel %vm276_vm1, 0.0, %v460_v49  ;;  %v477_v12 = vsel %vm276_vm1, 0.0, %v476_v7  ;;  %v496_v21 = vrot.slane %v481_v14, 4 }
 0x120   :  { %v427_v56 = vsel %vm276_vm1, 0.0, %v426_v53  ;;  %v497_v25 = vsel %vm276_vm1, 0.0, %v496_v21 }
 0x121   :  { %977 = vrot.lane.b32.xlu1 %v405_v9, %s1836_s18  ;;  %v467_v9 = vsel %vm276_vm1, 0.0, %v466_v3 }
 0x122   :  { %v475_v11 = vperm.slane %v467_v9, %v1948_v43 }
 0x124   :  { %v491_v20 = vperm.slane %v475_v11, %v1952_v46  ;;  %v486_v27 = vrot.slane %v475_v11, 4 }
 0x125   :  { %v2082_v59 = vpop.permute.xlu2 %250 }
 0x126   :  { %969 = vrot.lane.b32.xlu2 %v381_v5, %s1837_s19  ;;  %973 = vrot.lane.b32.xlu0 %v389_v15, %s1838_s20  ;;  %v487_v16 = vsel %vm276_vm1, 0.0, %v486_v27 }
 0x127   :  { %v495_v45 = vperm.slane %v487_v16, %v1952_v46 }
 0x129   :  { %989 = vrot.lane.b32.xlu1 %v423_v17, %s1839_s21  ;;  %v485_v17 = vperm.slane %v477_v12, %v1952_v46  ;;  %v502_v58 = vrot.slane %v495_v45, 4 }
 0x12b   :  { %v498_v44 = vrot.slane %v485_v17, 4  ;;  %v503_v49 = vsel %vm276_vm1, 0.0, %v502_v58 }
 0x12d   :  { %v2086_v60 = vpop.permute.xlu1 %226  ;;  %v2099_v29 = vpop.permute.xlu2 %945 }
 0x12e   :  { %981 = vrot.lane.b32.xlu2 %v421_v23, %s1840_s22  ;;  %985 = vrot.lane.b32.xlu0 %v409_v10, %s1841_s23  ;;  %v462_v10 = vrot.slane %v453_v62, 4  ;;  %v500_v23 = vrot.slane %v491_v20, 4 }
 0x130   :  { %v463_v13 = vsel %vm276_vm1, 0.0, %v462_v10  ;;  %v501_v34 = vsel %vm276_vm1, 0.0, %v500_v23 }
 0x131   :  { %1001 = vrot.lane.b32.xlu1 %v419_v28, %s2526_s24  ;;  %s2529_s24 = smov 66   ;;  %v2122_v28 = vpop.permute.xlu0 %238 }
 0x136   :  { %993 = vrot.lane.b32.xlu2 %v415_v24, %s2528_s1  ;;  %997 = vrot.lane.b32.xlu0 %v425_v41, %s2527_s25  ;;  %s2531_s25 = smov 62   ;;  %s2530_s1 = smov 64   ;;  %v509_v24 = vperm.slane %v265_v22, %v1948_v43  ;;  %v499_v41 = vsel %vm276_vm1, 0.0, %v498_v44 }
 0x138   :  { %v514_v38 = vrot.slane %v509_v24, 4  ;;  %v519_v52 = vperm.slane %v509_v24, %v1952_v46 }
 0x139   :  { %1013 = vrot.lane.b32.xlu1 %v459_v48, %s2529_s24  ;;  %s2532_s24 = smov 72  }
 0x13a   :  { %v515_v48 = vsel %vm276_vm1, 0.0, %v514_v38  ;;  %v534_v10 = vrot.slane %v519_v52, 4 }
 0x13d   :  { %v2097_v5 = vpop.permute.xlu1 %244 }
 0x13e   :  { %1005 = vrot.lane.b32.xlu2 %v427_v56, %s2531_s25  ;;  %1009 = vrot.lane.b32.xlu0 %v443_v30, %s2530_s1  ;;  %s2534_s1 = smov 68   ;;  %s2533_s25 = smov 70   ;;  %v523_v56 = vperm.slane %v515_v48, %v1952_v46 }
 0x140   :  { %v536_v1 = vrot.slane %v523_v56, 4 }
 0x141   :  { %1025 = vrot.lane.b32.xlu1 %v453_v62, %s2532_s24  ;;  %s2535_s24 = smov 78  }
 0x146   :  { %1017 = vrot.lane.b32.xlu2 %v447_v57, %s2534_s1  ;;  %1021 = vrot.lane.b32.xlu0 %v461_v4, %s2533_s25  ;;  %s2537_s25 = smov 74   ;;  %s2536_s1 = smov 76   ;;  %v505_v57 = vsel %vm276_vm1, 0.0, %v504_v40  ;;  %v537_v4 = vsel %vm276_vm1, 0.0, %v536_v1 }
 0x149   :  { %1037 = vrot.lane.b32.xlu1 %v465_v8, %s2535_s24  ;;  %s2538_s24 = smov 84   ;;  %v266_v8 = vsel %vm258_vm0, %v1930_v31, %v209_v18 }
 0x14a   :  { %v542_v18 = vrot.slane %v266_v8, 4 }
 0x14d   :  { %v2110_v15 = vpop.permute.xlu1 %256  ;;  %v2135_v53 = vpop.permute.xlu0 %913 }
 0x14e   :  { %1029 = vrot.lane.b32.xlu2 %v463_v13, %s2537_s25  ;;  %1033 = vrot.lane.b32.xlu0 %v457_v63, %s2536_s1  ;;  %s2540_s1 = smov 80   ;;  %s2539_s25 = smov 82   ;;  %v513_v63 = vperm.slane %v505_v57, %v1948_v43 }
 0x150   :  { %v886_v19 = vpop.permute.xlu2 %885  ;;  %v524_v7 = vrot.slane %v513_v63, 4  ;;  %v529_v31 = vperm.slane %v513_v63, %v1952_v46 }
 0x151   :  { %1049 = vrot.lane.b32.xlu1 %v485_v17, %s2538_s24  ;;  %s2541_s24 = smov 90   ;;  %v1389_v37 = vsel %vm1388_vm2, %v1988_v6, %v886_v19  ;;  %v547_v6 = vperm.slane %v266_v8, %v1948_v43 }
 0x152   :  { %v525_v13 = vsel %vm276_vm1, 0.0, %v524_v7  ;;  %v538_v24 = vrot.slane %v529_v31, 4 }
 0x153   :  { %v533_v19 = vperm.slane %v525_v13, %v1952_v46  ;;  %v552_v40 = vrot.slane %v547_v6, 4 }
 0x154   :  { %v539_v16 = vsel %vm276_vm1, 0.0, %v538_v24 }
 0x155   :  { %v2125_v39 = vpop.permute.xlu1 %917  ;;  %v540_v63 = vrot.slane %v533_v19, 4 }
 0x156   :  { %1041 = vrot.lane.b32.xlu2 %v481_v14, %s2540_s1  ;;  %1045 = vrot.lane.b32.xlu0 %v497_v25, %s2539_s25  ;;  %s2543_s25 = smov 86   ;;  %s2542_s1 = smov 88   ;;  %v535_v14 = vsel %vm276_vm1, 0.0, %v534_v10  ;;  %v543_v25 = vsel %vm276_vm1, 0.0, %v542_v18 }
 0x157   :  { %v551_v38 = vperm.slane %v543_v25, %v1948_v43 }
 0x158   :  { %v898_v30 = vpop.permute.xlu2 %897 }
 0x159   :  { %1061 = vrot.lane.b32.xlu1 %v501_v34, %s2541_s24  ;;  %s2544_s24 = smov 96  }
 0x15d   :  { %v2142_v62 = vpop.permute.xlu1 %929 }
 0x15e   :  { %1053 = vrot.lane.b32.xlu2 %v499_v41, %s2543_s25  ;;  %1057 = vrot.lane.b32.xlu0 %v491_v20, %s2542_s1  ;;  %s2547_s1 = smov 92   ;;  %s2545_s25 = smov 94   ;;  %v557_v20 = vperm.slane %v547_v6, %v1952_v46 }
 0x160   :  { %v2137_v54 = vpop.permute.xlu2 %921  ;;  %v572_v34 = vrot.slane %v557_v20, 4 }
 0x161   :  { %1073 = vrot.lane.b32.xlu1 %v519_v52, %s2544_s24  ;;  %s2546_s24 = smov 102  }
 0x162   :  { %v573_v57 = vsel %vm276_vm1, 0.0, %v572_v34 }
 0x166   :  { %1065 = vrot.lane.b32.xlu2 %v495_v45, %s2547_s1  ;;  %1069 = vrot.lane.b32.xlu0 %v503_v49, %s2545_s25  ;;  %s2555_s25 = smov 98   ;;  %s2548_s1 = smov 108  }
 0x168   :  { %v2150_v2 = vpop.permute.xlu2 %933  ;;  %v890_v3 = vpop.permute.xlu0 %889 }
 0x169   :  { %v1391_v9 = vsel %vm1390_vm3, %v1389_v37, %v890_v3  ;;  %1085 = vrot.lane.b32.xlu1 %v537_v4, %s2546_s24  ;;  %s2549_s24 = smov 100   ;;  %v541_v4 = vsel %vm276_vm1, 0.0, %v540_v63 }
 0x16b   :  { %v894_v11 = vpop.permute.xlu1 %893 }
 0x16c   :  { %v1393_v12 = vsel %vm1392_vm4, %v1391_v9, %v894_v11 }
 0x16d   :  { %v1395_v17 = vsel %vm1394_vm5, %v1393_v12, %v898_v30 }
 0x16e   :  { %1077 = vrot.lane.b32.xlu2 %v535_v14, %s2555_s25  ;;  %1081 = vrot.lane.b32.xlu0 %v523_v56, %s2549_s24  ;;  %s2552_s24 = smov 106   ;;  %s2561_s25 = smov 120  }
 0x170   :  { %v910_v21 = vpop.permute.xlu2 %909  ;;  %v902_v22 = vpop.permute.xlu0 %901 }
 0x171   :  { %v1397_v23 = vsel %vm1396_vm6, %v1395_v17, %v902_v22  ;;  %1097 = vrot.lane.b32.xlu1 %v533_v19, %s2548_s1  ;;  %s2550_s1 = smov 104  }
 0x173   :  { %v906_v27 = vpop.permute.xlu1 %905 }
 0x174   :  { %v1399_v30 = vsel %vm1398_vm7, %v1397_v23, %v906_v27 }
 0x175   :  { %v1401_v44 = vsel %vm1400_vm8, %v1399_v30, %v910_v21 }
 0x176   :  { %v1403_v41 = vsel %vm1402_vm9, %v1401_v44, %v2135_v53  ;;  %1089 = vrot.lane.b32.xlu2 %v529_v31, %s2550_s1  ;;  %1093 = vrot.lane.b32.xlu0 %v539_v16, %s2552_s24  ;;  %v562_v53 = vrot.slane %v551_v38, 4  ;;  %s2551_s1 = smov 114   ;;  %s2556_s24 = smov 112  }
 0x177   :  { %v1405_v45 = vsel %vm1404_vm10, %v1403_v41, %v2125_v39  ;;  %v267_v39 = vsel %vm258_vm0, %v1934_v33, %v2074_v51  ;;  %v567_v33 = vperm.slane %v551_v38, %v1952_v46 }
 0x178   :  { %v958_v48 = vpop.permute.xlu2 %957  ;;  %v1407_v52 = vsel %vm2589_vm11, %v1405_v45, %v2137_v54  ;;  %v926_v56 = vpop.permute.xlu0 %925  ;;  %v553_v54 = vsel %vm276_vm1, 0.0, %v552_v40  ;;  %v585_v3 = vperm.slane %v267_v39, %v1948_v43  ;;  %v563_v8 = vsel %vm276_vm1, 0.0, %v562_v53 }
 0x179   :  { %v1409_v58 = vsel %vm2559_vm12, %v1407_v52, %v926_v56  ;;  %1109 = vrot.lane.b32.xlu1 %v573_v57, %s2551_s1  ;;  %v561_v7 = vperm.slane %v553_v54, %v1952_v46  ;;  %s2557_s1 = smov 110   ;;  %v580_v17 = vrot.slane %v267_v39, 4  ;;  %vm2568_vm12 = vcmask 293888  }
 0x17a   :  { %v1411_v1 = vsel %vm2553_vm13, %v1409_v58, %v2142_v62  ;;  %vm2560_vm13 = vcmask 244736   ;;  %v590_v9 = vrot.slane %v585_v3, 4  ;;  %v576_v24 = vrot.slane %v567_v33, 4 }
 0x17b   :  { %v942_v49 = vpop.permute.xlu1 %941  ;;  %v1413_v37 = vsel %vm2554_vm14, %v1411_v1, %v2150_v2  ;;  %vm2565_vm14 = vcmask 261120   ;;  %v571_v2 = vperm.slane %v563_v8, %v1952_v46  ;;  %v574_v11 = vrot.slane %v561_v7, 4 }
 0x17c   :  { %v591_v18 = vsel %vm276_vm1, 0.0, %v590_v9  ;;  %v581_v22 = vsel %vm276_vm1, 0.0, %v580_v17  ;;  %v2219_v44 = vperm.slane %v585_v3, %v1952_v46  ;;  %v577_v16 = vsel %vm276_vm1, 0.0, %v576_v24 }
 0x17d   :  { %v578_v14 = vrot.slane %v571_v2, 4  ;;  %v575_v31 = vsel %vm276_vm1, 0.0, %v574_v11  ;;  %v589_v34 = vperm.slane %v581_v22, %v1948_v43  ;;  %v268_v52 = vsel %vm258_vm0, %v1967_v50, %v2060_v26 }
 0x17e   :  { %1101 = vrot.lane.b32.xlu2 %v541_v4, %s2557_s1  ;;  %1105 = vrot.lane.b32.xlu0 %v557_v20, %s2556_s24  ;;  %s2563_s24 = smov 116   ;;  %s2562_s1 = smov 118   ;;  %v610_v57 = vrot.slane %v2219_v44, 4  ;;  %v623_v39 = vperm.slane %v268_v52, %v1948_v43  ;;  %v618_v50 = vrot.slane %v268_v52, 4  ;;  %vm2595_vm11 = vcmask 736256  }
 0x17f   :  { %v579_v21 = vsel %vm276_vm1, 0.0, %v578_v14 }
 0x180   :  { %v970_v51 = vpop.permute.xlu2 %969  ;;  %v938_v62 = vpop.permute.xlu0 %937  ;;  %v611_v54 = vsel %vm276_vm1, 0.0, %v610_v57 }
 0x181   :  { %v1415_v10 = vsel %vm2558_vm15, %v1413_v37, %v938_v62  ;;  %1121 = vrot.lane.b32.xlu1 %v567_v33, %s2561_s25  ;;  %vm2564_vm15 = vcmask 277504   ;;  %s1875_s25 = smov 126   ;;  %v633_v37 = vperm.slane %v623_v39, %v1952_v46  ;;  %v619_v33 = vsel %vm276_vm1, 0.0, %v618_v50 }
 0x182   :  { %v1417_v6 = vsel %vm2560_vm13, %v1415_v10, %v942_v49  ;;  %vm2566_vm13 = vcmask 310272   ;;  %v605_v49 = vperm.slane %v589_v34, %v1952_v46  ;;  %v627_v10 = vperm.slane %v619_v33, %v1948_v43 }
 0x183   :  { %v954_v12 = vpop.permute.xlu1 %953  ;;  %v1419_v13 = vsel %vm2565_vm14, %v1417_v6, %v2099_v29  ;;  %v599_v29 = vperm.slane %v591_v18, %v1952_v46  ;;  %vm2571_vm14 = vcmask 343040   ;;  %v648_v9 = vrot.slane %v633_v37, 4 }
 0x184   :  { %v614_v8 = vrot.slane %v605_v49, 4  ;;  %v628_v6 = vrot.slane %v623_v39, 4  ;;  %v638_v17 = vrot.slane %v627_v10, 4 }
 0x185   :  { %v612_v38 = vrot.slane %v599_v29, 4  ;;  %v649_v14 = vsel %vm276_vm1, 0.0, %v648_v9 }
 0x186   :  { %1113 = vrot.lane.b32.xlu2 %v561_v7, %s2563_s24  ;;  %1117 = vrot.lane.b32.xlu0 %v575_v31, %s2562_s1  ;;  %s1876_s1 = smov 122   ;;  %s1877_s24 = smov 124   ;;  %v615_v11 = vsel %vm276_vm1, 0.0, %v614_v8  ;;  %v639_v24 = vsel %vm276_vm1, 0.0, %v638_v17 }
 0x187   :  { %v613_v45 = vsel %vm276_vm1, 0.0, %v612_v38  ;;  %v269_v38 = vsel %vm258_vm0, %v1932_v32, %v2086_v60 }
 0x188   :  { %v982_v19 = vpop.permute.xlu2 %981  ;;  %v950_v20 = vpop.permute.xlu0 %949  ;;  %v661_v52 = vperm.slane %v269_v38, %v1948_v43  ;;  %v656_v57 = vrot.slane %v269_v38, 4 }
 0x189   :  { %v1421_v23 = vsel %vm2564_vm15, %v1419_v13, %v950_v20  ;;  %1133 = vrot.lane.b32.xlu1 %v579_v21, %s1875_s25  ;;  %vm2567_vm15 = vcmask 326656   ;;  %v629_v20 = vsel %vm276_vm1, 0.0, %v628_v6 }
 0x18a   :  { %v1423_v25 = vsel %vm2568_vm12, %v1421_v23, %v954_v12  ;;  %vm2572_vm12 = vcmask 392192   ;;  %v637_v23 = vperm.slane %v629_v20, %v1952_v46  ;;  %v666_v32 = vrot.slane %v661_v52, 4 }
 0x18b   :  { %v966_v27 = vpop.permute.xlu1 %965  ;;  %v1425_v30 = vsel %vm2566_vm13, %v1423_v25, %v958_v48  ;;  %vm2569_vm13 = vcmask 359424   ;;  %v600_v48 = vrot.slane %v589_v34, 4  ;;  %v643_v25 = vperm.slane %v627_v10, %v1952_v46 }
 0x18c   :  { %v647_v34 = vperm.slane %v639_v24, %v1952_v46  ;;  %v657_v39 = vsel %vm276_vm1, 0.0, %v656_v57  ;;  %v270_v10 = vsel %vm258_vm0, %v1974_v55, %v2070_v47 }
 0x18d   :  { %v601_v1 = vsel %vm276_vm1, 0.0, %v600_v48 }
 0x18e   :  { %1125 = vrot.lane.b32.xlu2 %v577_v16, %s1876_s1  ;;  %1129 = vrot.lane.b32.xlu0 %v571_v2, %s1877_s24  ;;  %v609_v26 = vperm.slane %v601_v1, %v1952_v46 }
 0x190   :  { %v994_v40 = vpop.permute.xlu2 %993  ;;  %v962_v41 = vpop.permute.xlu0 %961  ;;  %v616_v18 = vrot.slane %v609_v26, 4 }
 0x191   :  { %v1427_v56 = vsel %vm2567_vm15, %v1425_v30, %v962_v41  ;;  %1145 = vrot.lane.b32.xlu1 %v613_v45, %s1821_s30  ;;  %vm2570_vm15 = vcmask 375808   ;;  %s2614_s30 = smov 72  }
 0x192   :  { %v1429_v53 = vsel %vm2571_vm14, %v1427_v56, %v966_v27  ;;  %vm2575_vm14 = vcmask 441344   ;;  %v617_v22 = vsel %vm276_vm1, 0.0, %v616_v18  ;;  %v654_v56 = vrot.slane %v647_v34, 4 }
 0x193   :  { %v978_v58 = vpop.permute.xlu1 %977  ;;  %v1431_v63 = vsel %vm2569_vm13, %v1429_v53, %v970_v51  ;;  %vm2574_vm13 = vcmask 408576  }
 0x196   :  { %1137 = vrot.lane.b32.xlu2 %v611_v54, %s1820_s29  ;;  %1141 = vrot.lane.b32.xlu0 %v599_v29, %s1819_s28  ;;  %v652_v54 = vrot.slane %v643_v25, 4  ;;  %s2612_s28 = smov 62   ;;  %s2613_s29 = smov 64  }
 0x198   :  { %v1006_v3 = vpop.permute.xlu2 %1005  ;;  %v974_v4 = vpop.permute.xlu0 %973 }
 0x199   :  { %v1433_v7 = vsel %vm2570_vm15, %v1431_v63, %v974_v4  ;;  %1157 = vrot.lane.b32.xlu1 %v609_v26, %s1824_s6  ;;  %vm2573_vm15 = vcmask 424960   ;;  %v655_v63 = vsel %vm276_vm1, 0.0, %v654_v56  ;;  %v653_v4 = vsel %vm276_vm1, 0.0, %v652_v54  ;;  %s2617_s6 = smov 78  }
 0x19a   :  { %v1435_v51 = vsel %vm2572_vm12, %v1433_v7, %v978_v58  ;;  %vm2576_vm12 = vcmask 457728   ;;  %v671_v7 = vperm.slane %v661_v52, %v1952_v46 }
 0x19b   :  { %v990_v62 = vpop.permute.xlu1 %989  ;;  %v1437_v2 = vsel %vm2574_vm13, %v1435_v51, %v982_v19  ;;  %vm2578_vm13 = vcmask 490496  }
 0x19c   :  { %v686_v9 = vrot.slane %v671_v7, 4 }
 0x19e   :  { %1149 = vrot.lane.b32.xlu2 %v605_v49, %s1823_s5  ;;  %1153 = vrot.lane.b32.xlu0 %v615_v11, %s1822_s4  ;;  %v687_v17 = vsel %vm276_vm1, 0.0, %v686_v9  ;;  %s2615_s4 = smov 68   ;;  %s2616_s5 = smov 70  }
 0x1a0   :  { %v1018_v12 = vpop.permute.xlu2 %1017  ;;  %v986_v13 = vpop.permute.xlu0 %985 }
 0x1a1   :  { %v1439_v31 = vsel %vm2573_vm15, %v1437_v2, %v986_v13  ;;  %1169 = vrot.lane.b32.xlu1 %v649_v14, %s1817_s26  ;;  %vm2577_vm15 = vcmask 474112   ;;  %v699_v14 = vperm.slane %v270_v10, %v1948_v43  ;;  %s2610_s26 = smov 58  }
 0x1a2   :  { %v1441_v19 = vsel %vm2575_vm14, %v1439_v31, %v990_v62  ;;  %vm2580_vm14 = vcmask 506880  }
 0x1a3   :  { %v1002_v21 = vpop.permute.xlu1 %1001  ;;  %v1443_v29 = vsel %vm2576_vm12, %v1441_v19, %v994_v40  ;;  %v650_v40 = vrot.slane %v637_v23, 4  ;;  %vm2579_vm12 = vcmask 523264   ;;  %v704_v47 = vrot.slane %v699_v14, 4 }
 0x1a4   :  { %v709_v38 = vperm.slane %v699_v14, %v1952_v46 }
 0x1a5   :  { %v651_v53 = vsel %vm276_vm1, 0.0, %v650_v40 }
 0x1a6   :  { %1161 = vrot.lane.b32.xlu2 %v617_v22, %s1831_s13  ;;  %1165 = vrot.lane.b32.xlu0 %v633_v37, %s1816_s2  ;;  %v665_v37 = vperm.slane %v657_v39, %v1948_v43  ;;  %s2609_s2 = smov 56   ;;  %s2624_s13 = smov 86  }
 0x1a8   :  { %v1030_v27 = vpop.permute.xlu2 %1029  ;;  %v998_v30 = vpop.permute.xlu0 %997  ;;  %v681_v62 = vperm.slane %v665_v37, %v1952_v46  ;;  %v676_v31 = vrot.slane %v665_v37, 4 }
 0x1a9   :  { %v1445_v16 = vsel %vm2577_vm15, %v1443_v29, %v998_v30  ;;  %1181 = vrot.lane.b32.xlu1 %v643_v25, %s1818_s27  ;;  %vm2581_vm15 = vcmask 539648   ;;  %v694_v25 = vrot.slane %v270_v10, 4  ;;  %s2611_s27 = smov 66  }
 0x1aa   :  { %v1447_v41 = vsel %vm2578_vm13, %v1445_v16, %v1002_v21  ;;  %vm2583_vm13 = vcmask 556032   ;;  %v690_v13 = vrot.slane %v681_v62, 4  ;;  %v677_v22 = vsel %vm276_vm1, 0.0, %v676_v31 }
 0x1ab   :  { %v1014_v45 = vpop.permute.xlu1 %1013  ;;  %v1449_v48 = vsel %vm2580_vm14, %v1447_v41, %v1006_v3  ;;  %v667_v3 = vsel %vm276_vm1, 0.0, %v666_v32  ;;  %vm2584_vm14 = vcmask 588800   ;;  %v685_v30 = vperm.slane %v677_v22, %v1952_v46 }
 0x1ac   :  { %v675_v8 = vperm.slane %v667_v3, %v1952_v46  ;;  %v691_v55 = vsel %vm276_vm1, 0.0, %v690_v13 }
 0x1ad   :  { %v692_v52 = vrot.slane %v685_v30, 4 }
 0x1ae   :  { %1173 = vrot.lane.b32.xlu2 %v637_v23, %s1826_s8  ;;  %1177 = vrot.lane.b32.xlu0 %v651_v53, %s1825_s7  ;;  %v688_v21 = vrot.slane %v675_v8, 4  ;;  %s2618_s7 = smov 74   ;;  %s2619_s8 = smov 76  }
 0x1b0   :  { %v1042_v60 = vpop.permute.xlu2 %1041  ;;  %v1010_v58 = vpop.permute.xlu0 %1009 }
 0x1b1   :  { %v1451_v1 = vsel %vm2579_vm12, %v1449_v48, %v1010_v58  ;;  %1193 = vrot.lane.b32.xlu1 %v655_v63, %s1827_s9  ;;  %vm2582_vm12 = vcmask 572416   ;;  %v693_v58 = vsel %vm276_vm1, 0.0, %v692_v52  ;;  %s2620_s9 = smov 84  }
 0x1b2   :  { %v1453_v49 = vsel %vm2581_vm15, %v1451_v1, %v1014_v45  ;;  %vm2586_vm15 = vcmask 605184   ;;  %v695_v45 = vsel %vm276_vm1, 0.0, %v694_v25 }
 0x1b3   :  { %v1026_v50 = vpop.permute.xlu1 %1025  ;;  %v1455_v26 = vsel %vm2583_vm13, %v1453_v49, %v1018_v12  ;;  %vm2587_vm13 = vcmask 637952   ;;  %v703_v32 = vperm.slane %v695_v45, %v1948_v43  ;;  %v271_v49 = vsel %vm258_vm0, %v1938_v35, %v2122_v28 }
 0x1b5   :  { %v714_v54 = vrot.slane %v703_v32, 4 }
 0x1b6   :  { %1185 = vrot.lane.b32.xlu2 %v653_v4, %s1829_s11  ;;  %1189 = vrot.lane.b32.xlu0 %v647_v34, %s1828_s10  ;;  %v705_v34 = vsel %vm276_vm1, 0.0, %v704_v47  ;;  %s2621_s10 = smov 80   ;;  %s2622_s11 = smov 82  }
 0x1b7   :  { %v713_v41 = vperm.slane %v705_v34, %v1952_v46 }
 0x1b8   :  { %v1054_v33 = vpop.permute.xlu2 %1053  ;;  %v1022_v51 = vpop.permute.xlu0 %1021 }
 0x1b9   :  { %v1457_v2 = vsel %vm2582_vm12, %v1455_v26, %v1022_v51  ;;  %1205 = vrot.lane.b32.xlu1 %v675_v8, %s1830_s12  ;;  %vm2585_vm12 = vcmask 621568   ;;  %v724_v26 = vrot.slane %v709_v38, 4  ;;  %v715_v8 = vsel %vm276_vm1, 0.0, %v714_v54  ;;  %s2623_s12 = smov 90  }
 0x1ba   :  { %v1459_v11 = vsel %vm2584_vm14, %v1457_v2, %v1026_v50  ;;  %vm2588_vm14 = vcmask 654336   ;;  %v719_v51 = vperm.slane %v703_v32, %v1952_v46  ;;  %v723_v35 = vperm.slane %v715_v8, %v1952_v46 }
 0x1bb   :  { %v1038_v6 = vpop.permute.xlu1 %1037  ;;  %v1461_v12 = vsel %vm2586_vm15, %v1459_v11, %v1030_v27  ;;  %v689_v27 = vsel %vm276_vm1, 0.0, %v688_v21  ;;  %vm1470_vm15 = vcmask 687104  }
 0x1bc   :  { %v728_v11 = vrot.slane %v719_v51, 4  ;;  %v730_v22 = vrot.slane %v723_v35, 4 }
 0x1be   :  { %1197 = vrot.lane.b32.xlu2 %v671_v7, %s1815_s0  ;;  %1201 = vrot.lane.b32.xlu0 %v687_v17, %s1832_s14  ;;  %v737_v7 = vperm.slane %v271_v49, %v1948_v43  ;;  %s2608_s0 = smov 60   ;;  %s2625_s14 = smov 88  }
 0x1c0   :  { %v1066_v18 = vpop.permute.xlu2 %1065  ;;  %v1034_v19 = vpop.permute.xlu0 %1033  ;;  %v747_v28 = vperm.slane %v737_v7, %v1952_v46 }
 0x1c1   :  { %v1463_v20 = vsel %vm2585_vm12, %v1461_v12, %v1034_v19  ;;  %1217 = vrot.lane.b32.xlu1 %v691_v55, %s1833_s15  ;;  %vm2590_vm12 = vcmask 670720   ;;  %v742_v19 = vrot.slane %v737_v7, 4  ;;  %s2626_s15 = smov 96  }
 0x1c2   :  { %v1465_v29 = vsel %vm2587_vm13, %v1463_v20, %v1038_v6  ;;  %vm2592_vm13 = vcmask 703488   ;;  %v762_v17 = vrot.slane %v747_v28, 4 }
 0x1c3   :  { %v1050_v23 = vpop.permute.xlu1 %1049  ;;  %v1467_v24 = vsel %vm2588_vm14, %v1465_v29, %v1042_v60  ;;  %v726_v60 = vrot.slane %v713_v41, 4  ;;  %vm2591_vm14 = vcmask 719872  }
 0x1c4   :  { %v763_v20 = vsel %vm276_vm1, 0.0, %v762_v17 }
 0x1c5   :  { %v727_v1 = vsel %vm276_vm1, 0.0, %v726_v60 }
 0x1c6   :  { %1209 = vrot.lane.b32.xlu2 %v689_v27, %s1834_s16  ;;  %1213 = vrot.lane.b32.xlu0 %v681_v62, %s1835_s17  ;;  %v732_v62 = vrot.slane %v271_v49, 4  ;;  %s2627_s16 = smov 92   ;;  %s2628_s17 = smov 94  }
 0x1c8   :  { %v1078_v16 = vpop.permute.xlu2 %1077  ;;  %v1046_v40 = vpop.permute.xlu0 %1045  ;;  %v733_v6 = vsel %vm276_vm1, 0.0, %v732_v62 }
 0x1c9   :  { %v1469_v48 = vsel %vm2590_vm12, %v1467_v24, %v1046_v40  ;;  %1229 = vrot.lane.b32.xlu1 %v709_v38, %s1836_s18  ;;  %vm2593_vm12 = vcmask 752640   ;;  %v741_v31 = vperm.slane %v733_v6, %v1948_v43  ;;  %v743_v24 = vsel %vm276_vm1, 0.0, %v742_v19  ;;  %s2629_s18 = smov 102  }
 0x1ca   :  { %v1471_v56 = vsel %vm1470_vm15, %v1469_v48, %v1050_v23  ;;  %v751_v34 = vperm.slane %v743_v24, %v1952_v46  ;;  %v272_v48 = vsel %vm258_vm0, %v1940_v36, %v2097_v5 }
 0x1cb   :  { %v1062_v57 = vpop.permute.xlu1 %1061  ;;  %v1473_v53 = vsel %vm2592_vm13, %v1471_v56, %v1054_v33  ;;  %v725_v33 = vsel %vm276_vm1, 0.0, %v724_v26  ;;  %vm2596_vm13 = vcmask 785408   ;;  %v752_v21 = vrot.slane %v741_v31, 4 }
 0x1cc   :  { %v764_v56 = vrot.slane %v751_v34, 4  ;;  %v775_v60 = vperm.slane %v272_v48, %v1948_v43 }
 0x1cd   :  { %v753_v38 = vsel %vm276_vm1, 0.0, %v752_v21 }
 0x1ce   :  { %1221 = vrot.lane.b32.xlu2 %v685_v30, %s1837_s19  ;;  %1225 = vrot.lane.b32.xlu0 %v693_v58, %s1838_s20  ;;  %v731_v30 = vsel %vm276_vm1, 0.0, %v730_v22  ;;  %v761_v45 = vperm.slane %v753_v38, %v1952_v46  ;;  %v780_v36 = vrot.slane %v775_v60, 4  ;;  %s2630_s19 = smov 98   ;;  %s2631_s20 = smov 100  }
 0x1d0   :  { %v1090_v63 = vpop.permute.xlu2 %1089  ;;  %v1058_v39 = vpop.permute.xlu0 %1057  ;;  %v768_v58 = vrot.slane %v761_v45, 4  ;;  %v781_v8 = vsel %vm276_vm1, 0.0, %v780_v36  ;;  %v274_v36 = vsel %vm258_vm0, %v1946_v42, %v2110_v15 }
 0x1d1   :  { %v1475_v50 = vsel %vm2591_vm14, %v1473_v53, %v1058_v39  ;;  %1241 = vrot.lane.b32.xlu1 %v727_v1, %s1839_s21  ;;  %vm2594_vm14 = vcmask 769024   ;;  %v765_v39 = vsel %vm276_vm1, 0.0, %v764_v56  ;;  %v789_v62 = vperm.slane %v781_v8, %v1952_v46  ;;  %s2632_s21 = smov 108  }
 0x1d2   :  { %v1477_v37 = vsel %vm2595_vm11, %v1475_v50, %v1062_v57  ;;  %vm2599_vm11 = vcmask 834560   ;;  %v769_v54 = vsel %vm276_vm1, 0.0, %v768_v58 }
 0x1d3   :  { %v1074_v3 = vpop.permute.xlu1 %1073  ;;  %v1479_v4 = vsel %vm2593_vm12, %v1477_v37, %v1066_v18  ;;  %vm2598_vm12 = vcmask 801792   ;;  %v729_v18 = vsel %vm276_vm1, 0.0, %v728_v11  ;;  %v273_v11 = vsel %vm258_vm0, %v1980_v61, %v2082_v59 }
 0x1d4   :  { %v813_v17 = vperm.slane %v273_v11, %v1948_v43  ;;  %vm2633_vm0 = vcmask 162816  }
 0x1d6   :  { %1233 = vrot.lane.b32.xlu2 %v725_v33, %s1840_s22  ;;  %1237 = vrot.lane.b32.xlu0 %v713_v41, %s1841_s23  ;;  %v818_v59 = vrot.slane %v813_v17, 4  ;;  %s2634_s22 = smov 104   ;;  %s2635_s23 = smov 106  }
 0x1d8   :  { %v1102_v2 = vpop.permute.xlu2 %1101  ;;  %v1070_v9 = vpop.permute.xlu0 %1069  ;;  %v819_v24 = vsel %vm276_vm1, 0.0, %v818_v59 }
 0x1d9   :  { %v1481_v10 = vsel %vm2594_vm14, %v1479_v4, %v1070_v9  ;;  %1253 = vrot.lane.b32.xlu1 %v723_v35, %s2608_s0  ;;  %vm2597_vm14 = vcmask 818176   ;;  %s2637_s0 = smov 114  }
 0x1da   :  { %v1483_v12 = vsel %vm2596_vm13, %v1481_v10, %v1074_v3  ;;  %vm2600_vm13 = vcmask 850944  }
 0x1db   :  { %v1086_v13 = vpop.permute.xlu1 %1085  ;;  %v1485_v14 = vsel %vm2598_vm12, %v1483_v12, %v1078_v16  ;;  %vm2602_vm12 = vcmask 883712   ;;  %v757_v16 = vperm.slane %v741_v31, %v1952_v46 }
 0x1dd   :  { %v766_v26 = vrot.slane %v757_v16, 4 }
 0x1de   :  { %1245 = vrot.lane.b32.xlu2 %v719_v51, %s2609_s2  ;;  %1249 = vrot.lane.b32.xlu0 %v729_v18, %s2610_s26  ;;  %v785_v51 = vperm.slane %v775_v60, %v1952_v46  ;;  %s2640_s2 = smov 110   ;;  %s2641_s26 = smov 112  }
 0x1df   :  { %v767_v33 = vsel %vm276_vm1, 0.0, %v766_v26  ;;  %v851_v26 = vperm.slane %v274_v36, %v1948_v43 }
 0x1e0   :  { %v1114_v55 = vpop.permute.xlu2 %1113  ;;  %v1082_v47 = vpop.permute.xlu0 %1081  ;;  %v800_v10 = vrot.slane %v785_v51, 4 }
 0x1e1   :  { %v1487_v29 = vsel %vm2597_vm14, %v1485_v14, %v1082_v47  ;;  %1265 = vrot.lane.b32.xlu1 %v763_v20, %s2611_s27  ;;  %vm2601_vm14 = vcmask 867328   ;;  %v802_v20 = vrot.slane %v789_v62, 4  ;;  %v861_v15 = vperm.slane %v851_v26, %v1952_v46  ;;  %s2643_s27 = smov 120  }
 0x1e2   :  { %v1489_v23 = vsel %vm2599_vm11, %v1487_v29, %v1086_v13  ;;  %vm2604_vm11 = vcmask 900096   ;;  %v801_v31 = vsel %vm276_vm1, 0.0, %v800_v10 }
 0x1e3   :  { %v1098_v25 = vpop.permute.xlu1 %1097  ;;  %v1491_v27 = vsel %vm2600_vm13, %v1489_v23, %v1090_v63  ;;  %v770_v63 = vrot.slane %v272_v48, 4  ;;  %vm2603_vm13 = vcmask 916480   ;;  %v808_v23 = vrot.slane %v273_v11, 4 }
 0x1e4   :  { %v876_v10 = vrot.slane %v861_v15, 4 }
 0x1e5   :  { %v771_v49 = vsel %vm276_vm1, 0.0, %v770_v63 }
 0x1e6   :  { %1257 = vrot.lane.b32.xlu2 %v731_v30, %s2612_s28  ;;  %1261 = vrot.lane.b32.xlu0 %v747_v28, %s2613_s29  ;;  %v779_v7 = vperm.slane %v771_v49, %v1948_v43  ;;  %v823_v30 = vperm.slane %v813_v17, %v1952_v46  ;;  %v877_v17 = vsel %vm276_vm1, 0.0, %v876_v10  ;;  %s2646_s28 = smov 116   ;;  %s2647_s29 = smov 118  }
 0x1e8   :  { %v1126_v40 = vpop.permute.xlu2 %1125  ;;  %v1094_v41 = vpop.permute.xlu0 %1093  ;;  %v790_v18 = vrot.slane %v779_v7, 4 }
 0x1e9   :  { %v1493_v52 = vsel %vm2601_vm14, %v1491_v27, %v1094_v41  ;;  %1277 = vrot.lane.b32.xlu1 %v757_v16, %s2614_s30  ;;  %vm2605_vm14 = vcmask 932864   ;;  %v809_v41 = vsel %vm276_vm1, 0.0, %v808_v23 }
 0x1ea   :  { %v1495_v57 = vsel %vm2602_vm12, %v1493_v52, %v1098_v25  ;;  %vm2607_vm12 = vcmask 949248   ;;  %v791_v29 = vsel %vm276_vm1, 0.0, %v790_v18  ;;  %v803_v25 = vsel %vm276_vm1, 0.0, %v802_v20 }
 0x1eb   :  { %v1110_v53 = vpop.permute.xlu1 %1109  ;;  %v1497_v32 = vsel %vm2604_vm11, %v1495_v57, %v1102_v2  ;;  %vm1506_vm11 = vcmask 982016   ;;  %v795_v2 = vperm.slane %v779_v7, %v1952_v46  ;;  %v799_v27 = vperm.slane %v791_v29, %v1952_v46 }
 0x1ec   :  { %v846_v7 = vrot.slane %v274_v36, 4 }
 0x1ed   :  { %v804_v14 = vrot.slane %v795_v2, 4  ;;  %v806_v48 = vrot.slane %v799_v27, 4 }
 0x1ee   :  { %1269 = vrot.lane.b32.xlu2 %v751_v34, %s2615_s4  ;;  %1273 = vrot.lane.b32.xlu0 %v765_v39, %s2616_s5  ;;  %s1595_s4 = sshll.u32 %s2525_s3, 4  ;;  %s1596_s4 = int_to_ptr.hbm [resolvable:$true] %s1595_s4 }
 0x1ef   :  { %v805_v61 = vsel %vm276_vm1, 0.0, %v804_v14 }
 0x1f0   :  { %v1138_v5 = vpop.permute.xlu2 %1137  ;;  %v1106_v1 = vpop.permute.xlu0 %1105 }
 0x1f1   :  { %v1499_v50 = vsel %vm2603_vm13, %v1497_v32, %v1106_v1  ;;  %1289 = vrot.lane.b32.xlu1 %v769_v54, %s2617_s6  ;;  %vm2606_vm13 = vcmask 965632   ;;  %v1514_v34 = vsel %vm1388_vm2, %v2219_v44, %v1138_v5  ;;  %v807_v44 = vsel %vm276_vm1, 0.0, %v806_v48 }
 0x1f2   :  { %v1501_v37 = vsel %vm2605_vm14, %v1499_v50, %v1110_v53  ;;  %vm1508_vm14 = vcmask 998400   ;;  %v817_v53 = vperm.slane %v809_v41, %v1948_v43  ;;  %v838_v1 = vrot.slane %v823_v30, 4 }
 0x1f3   :  { %v1122_v3 = vpop.permute.xlu1 %1121  ;;  %v1503_v4 = vsel %vm2607_vm12, %v1501_v37, %v1114_v55  ;;  %vm1512_vm12 = vcmask 1031168   ;;  %vm2636_vm2 = vcmask 179200  }
 0x1f4   :  { %v828_v60 = vrot.slane %v817_v53, 4 }
 0x1f6   :  { %1281 = vrot.lane.b32.xlu2 %v767_v33, %s2618_s7  ;;  %1285 = vrot.lane.b32.xlu0 %v761_v45, %s2619_s8  ;;  %v829_v37 = vsel %vm276_vm1, 0.0, %v828_v60 }
 0x1f7   :  { %v837_v42 = vperm.slane %v829_v37, %v1952_v46 }
 0x1f8   :  { %v1150_v35 = vpop.permute.xlu2 %1149  ;;  %v1118_v28 = vpop.permute.xlu0 %1117 }
 0x1f9   :  { %v1505_v9 = vsel %vm2606_vm13, %v1503_v4, %v1118_v28  ;;  %1301 = vrot.lane.b32.xlu1 %v789_v62, %s2620_s9  ;;  %vm1510_vm13 = vcmask 1014784   ;;  %v833_v4 = vperm.slane %v817_v53, %v1952_v46 }
 0x1fa   :  { %v1507_v6 = vsel %vm1506_vm11, %v1505_v9, %v1122_v3  ;;  %v839_v3 = vsel %vm276_vm1, 0.0, %v838_v1 }
 0x1fb   :  { %v1134_v12 = vpop.permute.xlu1 %1133  ;;  %v1509_v13 = vsel %vm1508_vm14, %v1507_v6, %v1126_v40  ;;  %v827_v40 = vperm.slane %v819_v24, %v1952_v46  ;;  %v842_v62 = vrot.slane %v833_v4, 4 }
 0x1fd   :  { %v840_v32 = vrot.slane %v827_v40, 4  ;;  %v843_v6 = vsel %vm276_vm1, 0.0, %v842_v62 }
 0x1fe   :  { %1293 = vrot.lane.b32.xlu2 %v785_v51, %s2621_s10  ;;  %1297 = vrot.lane.b32.xlu0 %v801_v31, %s2622_s11 }
 0x1ff   :  { %v841_v39 = vsel %vm276_vm1, 0.0, %v840_v32 }
 0x200   :  { %v1162_v19 = vpop.permute.xlu2 %1161  ;;  %v1130_v55 = vpop.permute.xlu0 %1129 }
 0x201   :  { %v1511_v47 = vsel %vm1510_vm13, %v1509_v13, %v1130_v55  ;;  %1313 = vrot.lane.b32.xlu1 %v805_v61, %s2623_s12 }
 0x202   :  { %v2399_v21 = vsel %vm1512_vm12, %v1511_v47, %v1134_v12  ;;  %v856_v12 = vrot.slane %v851_v26, 4 }
 0x203   :  { %v1146_v22 = vpop.permute.xlu1 %1145 }
 0x204   :  { %v857_v55 = vsel %vm276_vm1, 0.0, %v856_v12 }
 0x205   :  { %v865_v20 = vperm.slane %v857_v55, %v1952_v46 }
 0x206   :  { %1305 = vrot.lane.b32.xlu2 %v803_v25, %s2624_s13  ;;  %1309 = vrot.lane.b32.xlu0 %v795_v2, %s2625_s14 }
 0x208   :  { %v1174_v38 = vpop.permute.xlu2 %1173  ;;  %v1142_v16 = vpop.permute.xlu0 %1141 }
 0x209   :  { %v1515_v45 = vsel %vm1390_vm3, %v1514_v34, %v1142_v16  ;;  %1325 = vrot.lane.b32.xlu1 %v823_v30, %s2626_s15  ;;  %vm2638_vm3 = vcmask 195584   ;;  %v878_v30 = vrot.slane %v865_v20, 4 }
 0x20a   :  { %v1516_v52 = vsel %vm1392_vm4, %v1515_v45, %v1146_v22  ;;  %vm2639_vm4 = vcmask 211968  }
 0x20b   :  { %v1158_v56 = vpop.permute.xlu1 %1157  ;;  %v1517_v57 = vsel %vm1394_vm5, %v1516_v52, %v1150_v35  ;;  %v847_v35 = vsel %vm276_vm1, 0.0, %v846_v7  ;;  %vm2642_vm5 = vcmask 228352   ;;  %v879_v41 = vsel %vm276_vm1, 0.0, %v878_v30 }
 0x20c   :  { %v855_v11 = vperm.slane %v847_v35, %v1948_v43 }
 0x20e   :  { %1317 = vrot.lane.b32.xlu2 %v799_v27, %s2627_s16  ;;  %1321 = vrot.lane.b32.xlu0 %v807_v44, %s2628_s17  ;;  %v866_v31 = vrot.slane %v855_v11, 4  ;;  %v871_v22 = vperm.slane %v855_v11, %v1952_v46 }
 0x210   :  { %v1186_v58 = vpop.permute.xlu2 %1185  ;;  %v1154_v63 = vpop.permute.xlu0 %1153  ;;  %v867_v29 = vsel %vm276_vm1, 0.0, %v866_v31 }
 0x211   :  { %v1518_v5 = vsel %vm1396_vm6, %v1517_v57, %v1154_v63  ;;  %1337 = vrot.lane.b32.xlu1 %v841_v39, %s2629_s18  ;;  %v875_v25 = vperm.slane %v867_v29, %v1952_v46  ;;  %vm2644_vm6 = vcmask 244736  }
 0x212   :  { %v1519_v54 = vsel %vm1398_vm7, %v1518_v5, %v1158_v56  ;;  %vm2645_vm7 = vcmask 261120   ;;  %v880_v56 = vrot.slane %v871_v22, 4 }
 0x213   :  { %v1170_v49 = vpop.permute.xlu1 %1169  ;;  %v1520_v50 = vsel %vm1400_vm8, %v1519_v54, %v1162_v19  ;;  %v844_v19 = vrot.slane %v837_v42, 4  ;;  %vm2648_vm8 = vcmask 277504  }
 0x214   :  { %v881_v44 = vsel %vm276_vm1, 0.0, %v880_v56 }
 0x215   :  { %v845_v47 = vsel %vm276_vm1, 0.0, %v844_v19 }
 0x216   :  { %1329 = vrot.lane.b32.xlu2 %v839_v3, %s2630_s19  ;;  %1333 = vrot.lane.b32.xlu0 %v827_v40, %s2631_s20  ;;  %v882_v40 = vrot.slane %v875_v25, 4 }
 0x218   :  { %v1198_v8 = vpop.permute.xlu2 %1197  ;;  %v1166_v33 = vpop.permute.xlu0 %1165  ;;  %v883_v46 = vsel %vm276_vm1, 0.0, %v882_v40  ;;  %vm2656_vm1 = vcmask 408576  }
 0x219   :  { %v1521_v51 = vsel %vm1402_vm9, %v1520_v50, %v1166_v33  ;;  %1349 = vrot.lane.b32.xlu1 %v837_v42, %s2632_s21  ;;  %vm2649_vm9 = vcmask 293888  }
 0x21a   :  { %v1522_v28 = vsel %vm1404_vm10, %v1521_v51, %v1170_v49  ;;  %vm2650_vm10 = vcmask 310272  }
 0x21b   :  { %v1182_v2 = vpop.permute.xlu1 %1181  ;;  %v1523_v9 = vsel %vm2633_vm0, %v1522_v28, %v1174_v38  ;;  %vm2651_vm0 = vcmask 326656  }
 0x21e   :  { %1341 = vrot.lane.b32.xlu2 %v833_v4, %s2634_s22  ;;  %1345 = vrot.lane.b32.xlu0 %v843_v6, %s2635_s23 }
 0x220   :  { %v1210_v13 = vpop.permute.xlu2 %1209  ;;  %v1178_v14 = vpop.permute.xlu0 %1177 }
 0x221   :  { %v1524_v18 = vsel %vm2636_vm2, %v1523_v9, %v1178_v14  ;;  %1361 = vrot.lane.b32.xlu1 %v877_v17, %s2637_s0  ;;  %vm2652_vm2 = vcmask 343040  }
 0x222   :  { %v1525_v43 = vsel %vm2638_vm3, %v1524_v18, %v1182_v2  ;;  %vm2653_vm3 = vcmask 359424  }
 0x223   :  { %v1194_v61 = vpop.permute.xlu1 %1193  ;;  %v1526_v59 = vsel %vm2639_vm4, %v1525_v43, %v1186_v58  ;;  %vm2654_vm4 = vcmask 375808  }
 0x226   :  { %1353 = vrot.lane.b32.xlu2 %v845_v47, %s2640_s2  ;;  %1357 = vrot.lane.b32.xlu0 %v861_v15, %s2641_s26 }
 0x228   :  { %v1222_v23 = vpop.permute.xlu2 %1221  ;;  %v1190_v24 = vpop.permute.xlu0 %1189 }
 0x229   :  { %v1527_v27 = vsel %vm2642_vm5, %v1526_v59, %v1190_v24  ;;  %1373 = vrot.lane.b32.xlu1 %v871_v22, %s2643_s27  ;;  %vm2655_vm5 = vcmask 392192  }
 0x22a   :  { %v1528_v34 = vsel %vm2644_vm6, %v1527_v27, %v1194_v61  ;;  %vm2657_vm6 = vcmask 424960  }
 0x22b   :  { %v1206_v38 = vpop.permute.xlu1 %1205  ;;  %v1529_v16 = vsel %vm2645_vm7, %v1528_v34, %v1198_v8  ;;  %vm2658_vm7 = vcmask 441344  }
 0x22e   :  { %1365 = vrot.lane.b32.xlu2 %v865_v20, %s2646_s28  ;;  %1369 = vrot.lane.b32.xlu0 %v879_v41, %s2647_s29 }
 0x230   :  { %v1234_v45 = vpop.permute.xlu2 %1233  ;;  %v1202_v48 = vpop.permute.xlu0 %1201 }
 0x231   :  { %v1530_v52 = vsel %vm2648_vm8, %v1529_v16, %v1202_v48  ;;  %1385 = vrot.lane.b32.xlu1 %v883_v46, %s1875_s25  ;;  %vm2659_vm8 = vcmask 457728  }
 0x232   :  { %v1531_v57 = vsel %vm2649_vm9, %v1530_v52, %v1206_v38  ;;  %vm2660_vm9 = vcmask 474112  }
 0x233   :  { %v1218_v53 = vpop.permute.xlu1 %1217  ;;  %v1532_v32 = vsel %vm2650_vm10, %v1531_v57, %v1210_v13  ;;  %vm2661_vm10 = vcmask 490496  }
 0x236   :  { %1377 = vrot.lane.b32.xlu2 %v881_v44, %s1876_s1  ;;  %1381 = vrot.lane.b32.xlu0 %v875_v25, %s1877_s24  ;;  %s1878_s24 = smov [#allocation8]  }
 0x237   :  { %s1593_s1 = sshll.u32 %s1878_s24, 4  ;;  %s1594_s1 = int_to_ptr.vmem [resolvable:$true] %s1593_s1 }
 0x238   :  { %v1214_v60 = vpop.permute.xlu0 %1213  ;;  %v1246_v58 = vpop.permute.xlu2 %1245 }
 0x239   :  { %v1533_v63 = vsel %vm2651_vm0, %v1532_v32, %v1214_v60  ;;  %vm2662_vm0 = vcmask 506880  }
 0x23a   :  { %v1534_v39 = vsel %vm2652_vm2, %v1533_v63, %v1218_v53  ;;  %vm2663_vm2 = vcmask 523264  }
 0x23b   :  { %v1230_v36 = vpop.permute.xlu1 %1229  ;;  %v1535_v5 = vsel %vm2653_vm3, %v1534_v39, %v1222_v23  ;;  %vm2664_vm3 = vcmask 539648  }
 0x240   :  { %v1226_v1 = vpop.permute.xlu0 %1225  ;;  %v1258_v50 = vpop.permute.xlu2 %1257 }
 0x241   :  { %v1536_v54 = vsel %vm2654_vm4, %v1535_v5, %v1226_v1  ;;  %vm2665_vm4 = vcmask 556032  }
 0x242   :  { %v1537_v49 = vsel %vm2655_vm5, %v1536_v54, %v1230_v36  ;;  %vm2666_vm5 = vcmask 572416  }
 0x243   :  { %v1242_v26 = vpop.permute.xlu1 %1241  ;;  %v1538_v15 = vsel %vm2656_vm1, %v1537_v49, %v1234_v45  ;;  %vm2667_vm1 = vcmask 588800  }
 0x248   :  { %v1238_v37 = vpop.permute.xlu0 %1237  ;;  %v1270_v4 = vpop.permute.xlu2 %1269 }
 0x249   :  { %v1539_v8 = vsel %vm2657_vm6, %v1538_v15, %v1238_v37  ;;  %vm2668_vm6 = vcmask 605184  }
 0x24a   :  { %v1540_v51 = vsel %vm2658_vm7, %v1539_v8, %v1242_v26  ;;  %vm2669_vm7 = vcmask 621568  }
 0x24b   :  { %v1254_v3 = vpop.permute.xlu1 %1253  ;;  %v1541_v35 = vsel %vm2659_vm8, %v1540_v51, %v1246_v58  ;;  %vm2670_vm8 = vcmask 637952  }
 0x250   :  { %v1250_v7 = vpop.permute.xlu0 %1249  ;;  %v1282_v33 = vpop.permute.xlu2 %1281 }
 0x251   :  { %v1542_v2 = vsel %vm2660_vm9, %v1541_v35, %v1250_v7  ;;  %vm2671_vm9 = vcmask 654336  }
 0x252   :  { %v1543_v9 = vsel %vm2661_vm10, %v1542_v2, %v1254_v3  ;;  %vm2672_vm10 = vcmask 670720  }
 0x253   :  { %v1266_v42 = vpop.permute.xlu1 %1265  ;;  %v1544_v6 = vsel %vm2662_vm0, %v1543_v9, %v1258_v50  ;;  %vm2673_vm0 = vcmask 703488  }
 0x258   :  { %v1262_v62 = vpop.permute.xlu0 %1261  ;;  %v1294_v11 = vpop.permute.xlu2 %1293 }
 0x259   :  { %v1545_v12 = vsel %vm2663_vm2, %v1544_v6, %v1262_v62  ;;  %vm2674_vm2 = vcmask 719872  }
 0x25a   :  { %v1546_v14 = vsel %vm2664_vm3, %v1545_v12, %v1266_v42  ;;  %vm2675_vm3 = vcmask 736256  }
 0x25b   :  { %v1278_v28 = vpop.permute.xlu1 %1277  ;;  %v1547_v31 = vsel %vm2665_vm4, %v1546_v14, %v1270_v4  ;;  %vm2676_vm4 = vcmask 752640  }
 0x260   :  { %v1274_v10 = vpop.permute.xlu0 %1273  ;;  %v1306_v19 = vpop.permute.xlu2 %1305 }
 0x261   :  { %v1548_v18 = vsel %vm2666_vm5, %v1547_v31, %v1274_v10  ;;  %vm2677_vm5 = vcmask 769024  }
 0x262   :  { %v1549_v43 = vsel %vm2667_vm1, %v1548_v18, %v1278_v28  ;;  %vm2678_vm1 = vcmask 785408  }
 0x263   :  { %v1290_v13 = vpop.permute.xlu1 %1289  ;;  %v1550_v61 = vsel %vm2668_vm6, %v1549_v43, %v1282_v33  ;;  %vm2680_vm6 = vcmask 818176  }
 0x268   :  { %v1286_v17 = vpop.permute.xlu0 %1285  ;;  %v1318_v22 = vpop.permute.xlu2 %1317 }
 0x269   :  { %v1551_v47 = vsel %vm2669_vm7, %v1550_v61, %v1286_v17  ;;  %vm2681_vm7 = vcmask 834560  }
 0x26a   :  { %v1552_v29 = vsel %vm2670_vm8, %v1551_v47, %v1290_v13  ;;  %vm2682_vm8 = vcmask 850944  }
 0x26b   :  { %v1302_v55 = vpop.permute.xlu1 %1301  ;;  %v1553_v23 = vsel %vm2671_vm9, %v1552_v29, %v1294_v11  ;;  %vm2683_vm9 = vcmask 867328  }
 0x270   :  { %v1298_v59 = vpop.permute.xlu0 %1297  ;;  %v1330_v38 = vpop.permute.xlu2 %1329 }
 0x271   :  { %v1554_v24 = vsel %vm2672_vm10, %v1553_v23, %v1298_v59  ;;  %vm2684_vm10 = vcmask 883712  }
 0x272   :  { %v1555_v27 = vsel %vm1470_vm15, %v1554_v24, %v1302_v55  ;;  %vm2679_vm15 = vcmask 801792  }
 0x273   :  { %v1314_v20 = vpop.permute.xlu1 %1313  ;;  %v1556_v34 = vsel %vm2673_vm0, %v1555_v27, %v1306_v19  ;;  %vm2685_vm0 = vcmask 900096  }
 0x278   :  { %v1310_v25 = vpop.permute.xlu0 %1309  ;;  %v1342_v56 = vpop.permute.xlu2 %1341 }
 0x279   :  { %v1557_v16 = vsel %vm2674_vm2, %v1556_v34, %v1310_v25  ;;  %vm2686_vm2 = vcmask 916480  }
 0x27a   :  { %v1558_v41 = vsel %vm2675_vm3, %v1557_v16, %v1314_v20  ;;  %vm2687_vm3 = vcmask 932864  }
 0x27b   :  { %v1326_v30 = vpop.permute.xlu1 %1325  ;;  %v1559_v48 = vsel %vm2676_vm4, %v1558_v41, %v1318_v22  ;;  %vm2688_vm4 = vcmask 949248  }
 0x280   :  { %v1322_v40 = vpop.permute.xlu0 %1321  ;;  %v1354_v63 = vpop.permute.xlu2 %1353 }
 0x281   :  { %v1560_v46 = vsel %vm2677_vm5, %v1559_v48, %v1322_v40  ;;  %vm2689_vm5 = vcmask 965632  }
 0x282   :  { %v1561_v57 = vsel %vm2678_vm1, %v1560_v46, %v1326_v30  ;;  %vm1580_vm1 = vcmask 1040384  }
 0x283   :  { %v1338_v45 = vpop.permute.xlu1 %1337  ;;  %v1562_v32 = vsel %vm2679_vm15, %v1561_v57, %v1330_v38  ;;  %vm1585_vm15 = vcmp.lt.s32.totalorder %v65_v0, 256 }
 0x288   :  { %v1334_v52 = vpop.permute.xlu0 %1333  ;;  %v1366_v26 = vpop.permute.xlu2 %1365 }
 0x289   :  { %v1563_v44 = vsel %vm2680_vm6, %v1562_v32, %v1334_v52 }
 0x28a   :  { %v1564_v60 = vsel %vm2681_vm7, %v1563_v44, %v1338_v45 }
 0x28b   :  { %v1350_v53 = vpop.permute.xlu1 %1349  ;;  %v1565_v39 = vsel %vm2682_vm8, %v1564_v60, %v1342_v56 }
 0x290   :  { %v1346_v58 = vpop.permute.xlu0 %1345  ;;  %v1378_v8 = vpop.permute.xlu2 %1377 }
 0x291   :  { %v1566_v36 = vsel %vm2683_vm9, %v1565_v39, %v1346_v58 }
 0x292   :  { %v1567_v1 = vsel %vm2684_vm10, %v1566_v36, %v1350_v53 }
 0x293   :  { %v1362_v5 = vpop.permute.xlu1 %1361  ;;  %v1568_v49 = vsel %vm2685_vm0, %v1567_v1, %v1354_v63 }
 0x298   :  { %v1358_v54 = vpop.permute.xlu0 %1357 }
 0x299   :  { %v1569_v50 = vsel %vm2686_vm2, %v1568_v49, %v1358_v54 }
 0x29a   :  { %v1570_v37 = vsel %vm2687_vm3, %v1569_v50, %v1362_v5 }
 0x29b   :  { %v1374_v3 = vpop.permute.xlu1 %1373  ;;  %v1571_v7 = vsel %vm2688_vm4, %v1570_v37, %v1366_v26 }
 0x2a0   :  { %v1370_v4 = vpop.permute.xlu0 %1369 }
 0x2a1   :  { %v1572_v42 = vsel %vm2689_vm5, %v1571_v7, %v1370_v4 }
 0x2a2   :  { %v1573_v15 = vsel %vm1506_vm11, %v1572_v42, %v1374_v3 }
 0x2a3   :  { %v1574_v33 = vsel %vm1508_vm14, %v1573_v15, %v1378_v8  ;;  %v1386_v62 = vpop.permute.xlu1 %1385 }
 0x2a8   :  { %v1382_v51 = vpop.permute.xlu0 %1381 }
 0x2a9   :  { %v1575_v35 = vsel %vm1510_vm13, %v1574_v33, %v1382_v51 }
 0x2aa   :  { %v1576_v28 = vsel %vm1512_vm12, %v1575_v35, %v1386_v62 }
 0x2ab   :  { %v1579_v2 = vrot.slane %v1576_v28, 7 }
 0x2ad   :  { %v1581_v9 = vsel %vm1580_vm1, %v2399_v21, %v1579_v2 }
 0x2ae   :  { %1587 = vst.msk [vmem:[#allocation8] sm:$0x3] %vm1585_vm15, %v1581_v9 }
 0x2af   :  { %1598 = dma.vmem_to_hbm [thread:$0]  %s1594_s1, 32, %s1596_s4, [#allocation4]  }
 0x2b0   :  { %1808 = dma.done.wait [#allocation4], 32  }
 0x2b1   :  { %1809 = vsyncadd [#allocation4], 4294967264 }
 0x2b2   :  { %1603 = vsyncpa [#allocation3], 1 }
 0x2b3   :  { %1604 = vsyncpa [#allocation6], 1 }
 0x2b4   :  { %1605 = vsyncpa [#allocation4], 1 }

// kernel: tpu_custom_call.1
= control target key start
LH: loop header
LB: loop body
LE: loop exit
PB: predicated region body
PF: predicated region fallthrough
CT: control target
= control target key end

     0   :  { %8 = vsyncpa [#allocation3], 0  ;;  %s855_s0 = inlined_call_operand.hbm [shape: f32[1,256], index: 0, kind: input, shape index: {}]   ;;  %s856_s1 = inlined_call_operand.hbm [shape: f32[1,256], index: 1, kind: input, shape index: {}]   ;;  %s857_s2 = inlined_call_operand.hbm [shape: f32[2,2,256], index: 2, kind: input, shape index: {}]   ;;  %s858_s3 = inlined_call_operand.hbm [shape: f32[2,2,256], index: 3, kind: output, shape index: {}]  }
   0x1   :  { %9 = vsyncpa [#allocation6], 0 }
   0x2   :  { %10 = vsyncpa [#allocation4], 0 }
   0x3   :  { %12 = vsyncpa [#allocation4 + $0x1], 0  ;;  %s704_s12 = smov 0   ;;  %s706_s13 = smov 0  }
   0x4   :  { %s708_s14 = smov 0   ;;  %s710_s15 = smov 0  }
   0x5   :  { %s712_s16 = smov 0   ;;  %s714_s17 = smov 0  }
   0x6 LB: > { %s735_s18 = sadd.s32 4294967295, %s680_s17   ;;  %s395_s19 = sadd.s32 4294967294, %s680_s17   ;;  %s680_s17 = sphi %s714_s17, %s18_s17   ;;  %s676_s16 = sphi %s712_s16, %s868_s16   ;;  %s672_s15 = sphi %s710_s15, %s867_s15   ;;  %s668_s14 = sphi %s708_s14, %s866_s14   ;;  %s664_s13 = sphi %s706_s13, %s865_s13   ;;  %s660_s12 = sphi %s704_s12, %s864_s12  }
   0x7   : > { %p104_p0 = scmp.ne.s32.totalorder %s664_s13, %s660_s12  ;;  %p105_p1 = scmp.eq.s32.totalorder %s735_s18, 0 }
   0x8   : > { %p130_p2 = scmp.eq.s32.totalorder %s735_s18, 1  ;;  %p136_p3 = scmp.eq.s32.totalorder %s395_s19, 1 }
   0x9   : > { %p744_p4 = por %p105_p1, %p104_p0  ;;  %p396_p5 = scmp.ge.s32.totalorder %s680_s17, 1 }
   0xa   : > { %p749_p6 = por %p136_p3, %p104_p0  ;;  %p143_p7 = scmp.lt.s32.totalorder %s680_s17, 3 }
   0xb   : > { %s157_s24 = sshll.u32 %s855_s0, 4  ;;  %p399_p9 = scmp.ge.s32.totalorder %s680_s17, 2  ;;  %s158_s24 = int_to_ptr.hbm [resolvable:$true] %s157_s24 }
   0xc   : > { %p757_p8 = pnand %p396_p5, %p143_p7  ;;  %s682_s26 = smov [#allocation2]  }
   0xd   : > { %s159_s27 = sshll.u32 %s682_s26, 4  ;;  %s171_s30 = sshll.u32 %s856_s1, 4  ;;  %s160_s27 = int_to_ptr.vmem [resolvable:$true] %s159_s27  ;;  %s172_s30 = int_to_ptr.hbm [resolvable:$true] %s171_s30 }
   0xe   : > { %p429_p10 = pneg %p757_p8  ;;  %s683_s4 = smov [#allocation5]  }
   0xf   : > { %s173_s5 = sshll.u32 %s683_s4, 4  ;;  %s30_s6 = sadd.s32 1, %s676_s16  ;;  %s174_s5 = int_to_ptr.vmem [resolvable:$true] %s173_s5 }
  0x10   : > { %p430_p11 = pnand %p429_p10, %p105_p1  ;;  %s91_s7 = sadd.s32 1, %s668_s14 }
  0x11   : > { %p32_p12 = scmp.ge.s32.totalorder %s30_s6, 2  ;;  %p98_p13 = scmp.ne.s32.totalorder %s668_s14, %s664_s13 }
  0x12   : > { %432 = dma.hbm_to_vmem [thread:$0]  (!%p430_p11), %s158_s24, 32, %s160_s27, [#allocation3]  }
  0x13   : > { %435 = dma.hbm_to_vmem [thread:$0]  (!%p430_p11), %s172_s30, 32, %s174_s5, [#allocation6]  }
  0x14   : > { %p99_p0 = scmp.eq.s32.totalorder %s680_s17, 0  ;;  %p446_p3 = scmp.lt.s32.totalorder %s680_s17, 2 }
  0x15   : > { %s870_s6 = smov (%p32_p12, %s30_s6), 0  ;;  %p783_p7 = por %p130_p2, %p98_p13 }
  0x16   : > { %p777_p5 = por %p99_p0, %p98_p13  ;;  %s86_s10 = ssub.s32 %s676_s16, %s870_s6 }
  0x17   : > { %s184_s11 = sand.u32 1, %s680_s17   ;;  %p89_p10 = scmp.eq.s32.totalorder %s86_s10, 0 }
  0x18   : > { %s186_s19 = sand.u32 1, %s668_s14   ;;  %s415_s22 = sshll.u32 %s676_s16, 2 }
  0x19   : > { %s793_s23 = scalar_select %p89_p10, %s668_s14, %s91_s7  }
  0x1a   : > { %s400_s24 = sshll.u32 %s186_s19, 2  ;;  %s195_s28 = scalar_lea.hbm %s857_s2, %s415_s22 }
  0x1b   : > { %s197_s29 = sshll.u32 %s195_s28, 4  ;;  %s188_s30 = scalar_lea.vmem [#allocation7], %s400_s24  ;;  %s198_s29 = int_to_ptr.hbm [resolvable:$true] %s197_s29 }
  0x1c   : > { %s199_s4 = sshll.u32 %s188_s30, 4  ;;  %p437_p2 = pnand %p446_p3, %p777_p5  ;;  %s200_s4 = int_to_ptr.vmem [resolvable:$true] %s199_s4 }
  0x1d   : > { %s185_s5 = scalar_lea.sflag [#allocation3], %s184_s11  ;;  %208 = sbr.rel (%p757_p8) target bundleno = 56 (0x38), region = 32 }
  0x1e   : > { %439 = dma.hbm_to_vmem [thread:$0]  (!%p437_p2), %s198_s29, 64, %s200_s4, %s185_s5  }
  0x22   : > { %643 = dma.done.wait (%p105_p1), [#allocation3], 32  }
  0x23   : > { %645 = vsyncadd (%p105_p1), [#allocation3], 4294967264 }
  0x24   : > { %647 = dma.done.wait (%p105_p1), [#allocation6], 32  }
  0x25   : > { %649 = vsyncadd (%p105_p1), [#allocation6], 4294967264  ;;  %s220_s7 = sand.u32 1, %s735_s18   ;;  %s222_s8 = sand.u32 1, %s664_s13  }
  0x26   : > { %s406_s10 = sshll.u32 %s222_s8, 2  ;;  %s221_s25 = scalar_lea.sflag [#allocation3], %s220_s7 }
  0x27   : > { %s224_s11 = scalar_lea.vmem [#allocation7], %s406_s10 }
  0x28   : > { %651 = dma.done.wait (%p744_p4), %s221_s25, 64  }
  0x29   : > { %653 = vsyncadd (%p744_p4), %s221_s25, 4294967232  ;;  %s416_s19 = sshll.u32 %s672_s15, 2  ;;  %v261_v0 = vlaneseq  ;;  %v252_v1 = vld [vmem:[%s224_s11] ss:$2 sm:$0x3]  ;;  %s247_s27 = scalar_lea.vmem [#allocation8], %s406_s10 }
  0x2a   : > { %s282_s26 = scalar_lea.hbm %s858_s3, %s416_s19  ;;  %v255_v2 = vld [vmem:[#allocation2] sm:$0x3]  ;;  %s284_s18 = sshll.u32 %s247_s27, 4  ;;  %v256_v3 = vmul.f32 0.13333334, %v252_v1  ;;  %s285_s18 = int_to_ptr.vmem [resolvable:$true] %s284_s18 }
  0x2b   : > { %v408_v4 = vld [vmem:[%s224_s11 + $0x1] ss:$2 sm:$0x3]  ;;  %s286_s28 = sshll.u32 %s282_s26, 4  ;;  %vm263_vm0 = vcmp.lt.s32.totalorder %v261_v0, 256  ;;  %s269_s15 = scalar_lea.sflag [#allocation4], %s222_s8  ;;  %s287_s28 = int_to_ptr.hbm [resolvable:$true] %s286_s28 }
  0x2c   : > { %v258_v5 = vld [vmem:[#allocation5] sm:$0x3]  ;;  %v259_v6 = vmul.f32 0.13333334, %v408_v4  ;;  %v257_v7 = vadd.f32 %v256_v3, %v255_v2  ;;  %s604_s20 = sshra.s32 %s287_s28, 4  ;;  %s610_s5 = scalar_lea.hbm %s858_s3, 8  ;;  %s605_s20 = int_to_ptr.hbm [resolvable:$true] %s604_s20 }
  0x2d   : > { %s606_s29 = scalar_lea.hbm %s605_s20, 4  ;;  %p611_p11 = scmp.lt.s32.totalorder %s605_s20, %s858_s3 }
  0x2e   : > { %v260_v8 = vadd.f32 %v259_v6, %v258_v5  ;;  %265 = vst.msk [vmem:[%s247_s27] ss:$2 sm:$0x3] %vm263_vm0, %v257_v7  ;;  %p607_p1 = scmp.ne.s32.totalorder %s605_s20, %s606_s29  ;;  %p612_p12 = scmp.lt.s32.totalorder %s610_s5, %s606_s29 }
  0x30   : > { %409 = vst.msk [vmem:[%s247_s27 + $0x1] ss:$2 sm:$0x3] %vm263_vm0, %v260_v8  ;;  %p608_p4 = pnand %p607_p1, %p783_p7  ;;  %p613_p13 = por %p612_p12, %p611_p11 }
  0x32   : > { %p609_p8 = pneg %p608_p4 }
  0x34   : > { %p614_p0 = pnand %p613_p13, %p609_p8 }
  0x36   : > { %617 = shalt.err (!%p614_p0)
}
  0x37   : > { %427 = dma.vmem_to_hbm [thread:$0]  (%p783_p7), %s285_s18, 64, %s287_s28, %s269_s15  }
  0x38 PF: > { %s298_s8 = sand.u32 1, %s660_s12   ;;  %p441_p3 = pnand %p399_p9, %p749_p6 }
  0x39   : > { %s299_s25 = scalar_lea.sflag [#allocation4], %s298_s8 }
  0x3a   : > { %p442_p5 = pneg %p441_p3 }
  0x3c   : > { %655 = dma.done.wait (%p442_p5), %s299_s25, 64  }
  0x3d   : > { %657 = vsyncadd (%p442_p5), %s299_s25, 4294967232  ;;  %s18_s17 = sadd.s32 1, %s680_s17   ;;  %s864_s12 = smov %s664_s13 }
  0x3e   : > { %p15_p10 = scmp.ge.s32.totalorder %s18_s17, 4   ;;  %s865_s13 = smov %s668_s14 }
  0x3f   : > { %s866_s14 = smov %s793_s23  ;;  %s867_s15 = smov %s676_s16 }
  0x40   : > { %s868_s16 = smov %s870_s6  ;;  %17 = sbr.rel (!%p15_p10) target bundleno = 6 (0x6), region = 88 }
  0x45   :  { %305 = vsyncpa [#allocation3], 1 }
  0x46   :  { %307 = vsyncpa [#allocation3 + $0x1], 1 }
  0x47   :  { %308 = vsyncpa [#allocation6], 1 }
  0x48   :  { %309 = vsyncpa [#allocation4], 1 }
  0x49   :  { %311 = vsyncpa [#allocation4 + $0x1], 1 }

</bundles_post_ra>
